<compile_context>
chip_gen: v6e
topology: v6e:2x2x1
jax: 0.10.0
libtpu: 0.0.40
codegen_flags: <defaults>
</compile_context>

<pallas_src>
import functools
import math

import jax
import jax.numpy as jnp
from jax import lax
from jax.experimental import pallas as pl
from jax.experimental.pallas import tpu as pltpu

# ----------------------------- small model config -----------------------------
DIM = 64
N_HEADS = 4
N_KV_HEADS = 2
HEAD_DIM = DIM // N_HEADS          # 16
N_REP = N_HEADS // N_KV_HEADS      # 2
MULTIPLE_OF = 32
NORM_EPS = 1e-6
MAX_BATCH = 2
MAX_SEQ = 16

KV_WIDTH = N_KV_HEADS * HEAD_DIM   # 32
QKV_WIDTH = DIM + 2 * KV_WIDTH     # 128  (lane-dense fused QKV output)


def _ffn_hidden_dim(dim, multiple_of, multiplier=None):
    hidden = 4 * dim
    hidden = int(2 * hidden / 3)
    if multiplier:
        hidden = int(multiplier * hidden)
    return multiple_of * ((hidden + multiple_of - 1) // multiple_of)


HIDDEN_DIM = _ffn_hidden_dim(DIM, MULTIPLE_OF)   # 192


# ------------------------------ fused block kernel ------------------------------


def _encoder_block_kernel(
    x_ref, cos_ref, sin_ref, attn_nw_ref, ffn_nw_ref,
    wqkvr_ref, wo_ref, w13_ref, w2_ref, kc_old_ref, vc_old_ref,
    o_ref, kc_new_ref, vc_new_ref,
    *, batch, seq_len, has_past,
):
    B, S = batch, seq_len

    x = x_ref[...].astype(jnp.float32).reshape(B * S, DIM)           # (B*S, D)

    # ---------------- RMSNorm (attention), f32 on the VPU ----------------
    ms = jnp.mean(x * x, axis=-1, keepdims=True)
    xn = attn_nw_ref[...] * (x * lax.rsqrt(ms + NORM_EPS))           # (B*S, D)

    # ---- fused QKV(+pairswap) projection: one bf16 MXU pass, f32 accumulate ----
    # wqkvr = [Wq | Wk | Wv | pairswap(Wq) | pairswap(Wk) | 0]  (bf16)
    qkv2 = jnp.dot(xn.astype(jnp.bfloat16), wqkvr_ref[...],
                   preferred_element_type=jnp.float32)               # (B*S, 256)
    qkv = qkv2[:, :QKV_WIDTH].reshape(B, S, QKV_WIDTH)
    qkv_sw = qkv2[:, QKV_WIDTH:].reshape(B, S, QKV_WIDTH)
    # Rotary as pure elementwise math: the (S, 128) cos/sin tables carry the
    # interleaved-pair signs, fold 1/sqrt(head_dim) into the Q columns, and are
    # identity (cos=1, sin=0) for the V columns.
    rot = qkv * cos_ref[...][None] + qkv_sw * sin_ref[...][None]     # (B, S, 128) f32

    q = rot[..., :DIM]                                               # (B, S, D), pre-scaled
    k_new = rot[..., DIM:DIM + KV_WIDTH]                             # (B, S, KVH*hd)
    v_new = rot[..., DIM + KV_WIDTH:]                                # (B, S, KVH*hd)

    # ---- KV cache: write ONLY the S new rows (aliased, narrowed output block) ----
    kc_new_ref[...] = k_new.astype(kc_new_ref.dtype)
    vc_new_ref[...] = v_new.astype(vc_new_ref.dtype)

    # ------------- attention (no causal mask, matching the module) -------------
    wo = wo_ref[...]                                                 # (D, D) bf16
    pv_slices = [[None] * N_HEADS for _ in range(B)]
    for b in range(B):                                               # static -> unrolled
        if has_past:
            keys_b = jnp.concatenate(
                [kc_old_ref[b].astype(jnp.float32), k_new[b]], axis=0)   # (T, KVH*hd)
            vals_b = jnp.concatenate(
                [vc_old_ref[b].astype(jnp.float32), v_new[b]], axis=0)
        else:
            keys_b, vals_b = k_new[b], v_new[b]
        keys_bf = keys_b.astype(jnp.bfloat16)
        vals_bf = vals_b.astype(jnp.bfloat16)
        q_bf = q[b].astype(jnp.bfloat16)                             # (S, D)
        for kv in range(N_KV_HEADS):
            kh = keys_bf[:, kv * HEAD_DIM:(kv + 1) * HEAD_DIM]       # (T, hd)
            vh = vals_bf[:, kv * HEAD_DIM:(kv + 1) * HEAD_DIM]       # (T, hd)
            # Stack the N_REP query heads that share this KV head along sublanes:
            qg = jnp.concatenate(
                [q_bf[:, (kv * N_REP + r) * HEAD_DIM:(kv * N_REP + r + 1) * HEAD_DIM]
                 for r in range(N_REP)], axis=0)                     # (N_REP*S, hd)
            s = lax.dot_general(qg, kh, (((1,), (1,)), ((), ())),
                                preferred_element_type=jnp.float32)  # (N_REP*S, T)
            m = jnp.max(s, axis=-1, keepdims=True)
            p = jnp.exp(s - m)
            p = p / jnp.sum(p, axis=-1, keepdims=True)               # exact recip (softmax)
            pv = jnp.dot(p.astype(jnp.bfloat16), vh,
                         preferred_element_type=jnp.float32)         # (N_REP*S, hd)
            for r in range(N_REP):
                pv_slices[b][kv * N_REP + r] = pv[r * S:(r + 1) * S]

    # Per-head accumulation straight into Wo row-blocks (no lane concat of heads);
    # batches merged along sublanes.  h1 starts from the residual x.
    h1 = x
    for h in range(N_HEADS):
        ph = jnp.concatenate([pv_slices[b][h] for b in range(B)], axis=0)  # (B*S, hd)
        h1 = h1 + jnp.dot(ph.astype(jnp.bfloat16),
                          wo[h * HEAD_DIM:(h + 1) * HEAD_DIM, :],
                          preferred_element_type=jnp.float32)

    # ---------------- RMSNorm (FFN) + fused SwiGLU ----------------
    ms2 = jnp.mean(h1 * h1, axis=-1, keepdims=True)
    hn = ffn_nw_ref[...] * (h1 * lax.rsqrt(ms2 + NORM_EPS))
    h13 = jnp.dot(hn.astype(jnp.bfloat16), w13_ref[...],
                  preferred_element_type=jnp.float32)                # (B*S, 2*HIDDEN)
    g = h13[:, :HIDDEN_DIM]
    u = h13[:, HIDDEN_DIM:]
    swish = g * pl.reciprocal(1.0 + jnp.exp(-g), approx=True)        # SiLU via EUP recip
    ff = jnp.dot((swish * u).astype(jnp.bfloat16), w2_ref[...],
                 preferred_element_type=jnp.float32)

    # TODO(synk): at real sizes (D >= 128) this store is lane-dense; at toy D=64 it
    # remains a masked store -- not worth a relayout here.
    o_ref[...] = (h1 + ff).reshape(B, S, DIM).astype(o_ref.dtype)    # residual 2


def encoder_block(x, cos_tab, sin_tab, attn_norm_w, ffn_norm_w,
                  wqkvr_bf16, wo_bf16, w13_bf16, w2_bf16, k_cache, v_cache, start_pos):
    """Fused LLaMA-2 encoder block.  Returns (out, new_k_cache, new_v_cache)."""
    assert isinstance(start_pos, int), "start_pos must be a static Python int"
    B, S, D = x.shape
    assert D == DIM and B <= MAX_BATCH and start_pos + S <= MAX_SEQ
    assert S % 8 == 0, "S must be a multiple of 8 (sublane alignment)"
    # Chunked-prefill convention: the write window [start_pos, start_pos+S) must land
    # on a whole output block (hence on an 8-sublane boundary).
    assert start_pos % S == 0, "start_pos must be a multiple of the chunk length S"
    # TODO(synk): support unaligned start_pos via a full-cache fallback write path.

    # Keep the module's (MAX_BATCH, MAX_SEQ, KVH, hd) cache layout externally; fold the
    # two minor dims for lane-friendlier in-kernel access (row-major merge).
    kc3 = k_cache.reshape(MAX_BATCH, MAX_SEQ, KV_WIDTH)
    vc3 = v_cache.reshape(MAX_BATCH, MAX_SEQ, KV_WIDTH)

    has_past = start_pos > 0
    past = start_pos if has_past else S      # dummy (ignored) window when start_pos == 0

    kernel = functools.partial(_encoder_block_kernel,
                               batch=B, seq_len=S, has_past=has_past)

    def full_spec(shape):
        nd = len(shape)
        return pl.BlockSpec(shape, lambda i: (0,) * nd)

    cache_in_spec = pl.BlockSpec((B, past, KV_WIDTH), lambda i: (0, 0, 0))
    new_blk = start_pos // S
    cache_out_spec = pl.BlockSpec((B, S, KV_WIDTH), lambda i: (0, new_blk, 0))

    out, kc_new, vc_new = pl.pallas_call(
        kernel,
        grid=(1,),                            # single invocation; batch folded into rows
        in_specs=[
            pl.BlockSpec((B, S, D), lambda i: (0, 0, 0)),   # x
            full_spec(cos_tab.shape),                       # rotary cos table (S, 128)
            full_spec(sin_tab.shape),                       # rotary sin table (S, 128)
            full_spec(attn_norm_w.shape),
            full_spec(ffn_norm_w.shape),
            full_spec(wqkvr_bf16.shape),                    # (D, 256) fused QKV(+swap), bf16
            full_spec(wo_bf16.shape),                       # (D, D) bf16
            full_spec(w13_bf16.shape),                      # (D, 2*HIDDEN) bf16
            full_spec(w2_bf16.shape),                       # (HIDDEN, D) bf16
            cache_in_spec,                                  # k cache old rows [0, start_pos)
            cache_in_spec,                                  # v cache old rows [0, start_pos)
        ],
        out_specs=(
            pl.BlockSpec((B, S, D), lambda i: (0, 0, 0)),
            cache_out_spec,                                 # only the S new rows are written
            cache_out_spec,
        ),
        out_shape=(
            jax.ShapeDtypeStruct((B, S, D), x.dtype),
            jax.ShapeDtypeStruct(kc3.shape, kc3.dtype),
            jax.ShapeDtypeStruct(vc3.shape, vc3.dtype),
        ),
        input_output_aliases={9: 1, 10: 2},   # caches updated in place; untouched rows kept
        compiler_params=pltpu.CompilerParams(
            dimension_semantics=("arbitrary",),
            vmem_limit_bytes=32 * 1024 * 1024,  # v7x-safe scoped budget
        ),
    )(x, cos_tab, sin_tab, attn_norm_w, ffn_norm_w,
      wqkvr_bf16, wo_bf16, w13_bf16, w2_bf16, kc3, vc3)

    return (out,
            kc_new.reshape(MAX_BATCH, MAX_SEQ, N_KV_HEADS, HEAD_DIM),
            vc_new.reshape(MAX_BATCH, MAX_SEQ, N_KV_HEADS, HEAD_DIM))


# --------------------- one-time host-side parameter / table prep ---------------------


def _pairswap_cols(w):
    """Swap adjacent output columns (col 2i <-> col 2i+1)."""
    r = w.reshape(w.shape[0], -1, 2)
    return jnp.stack([r[..., 1], r[..., 0]], axis=-1).reshape(w.shape)


def build_fused_weights(params):
    """Fuse + pre-cast the MXU weights to bf16 (done once per model, not per call)."""
    wqkv = jnp.concatenate([params["wq_t"], params["wk_t"], params["wv_t"]], axis=1)
    wqkv_sw = jnp.concatenate(
        [_pairswap_cols(params["wq_t"]), _pairswap_cols(params["wk_t"]),
         jnp.zeros_like(params["wv_t"])], axis=1)
    wqkvr_bf16 = jnp.concatenate([wqkv, wqkv_sw], axis=1).astype(jnp.bfloat16)  # (D, 256)
    w13_bf16 = jnp.concatenate([params["w1_t"], params["w3_t"]], axis=1).astype(jnp.bfloat16)
    wo_bf16 = params["wo_t"].astype(jnp.bfloat16)
    w2_bf16 = params["w2_t"].astype(jnp.bfloat16)
    return wqkvr_bf16, wo_bf16, w13_bf16, w2_bf16


def build_rope_tables(start_pos, seq_len):
    """Full-width (S, QKV_WIDTH) cos/sin tables for the in-kernel rotation.
    Q columns carry 1/sqrt(head_dim); V columns are identity (cos=1, sin=0).
    Also returns the raw (S, hd/2) cos/sin used by the pure-JAX reference."""
    half = HEAD_DIM // 2
    inv_freq = 1.0 / (10000.0 ** (jnp.arange(0, HEAD_DIM, 2, dtype=jnp.float32) / HEAD_DIM))
    pos = jnp.arange(start_pos, start_pos + seq_len, dtype=jnp.float32)
    freqs = pos[:, None] * inv_freq[None, :]                           # (S, half)
    cos, sin = jnp.cos(freqs), jnp.sin(freqs)
    cos_h = jnp.repeat(cos, 2, axis=-1)                                # (S, hd)
    sin_h = jnp.repeat(sin, 2, axis=-1)
    sign = jnp.tile(jnp.array([-1.0, 1.0], jnp.float32), half)         # -sin on even cols
    sin_h = sin_h * sign[None, :]
    q_scale = 1.0 / math.sqrt(HEAD_DIM)
    ones_v = jnp.ones((seq_len, KV_WIDTH), jnp.float32)
    zeros_v = jnp.zeros((seq_len, KV_WIDTH), jnp.float32)
    cos_tab = jnp.concatenate(
        [jnp.tile(cos_h, (1, N_HEADS)) * q_scale,
         jnp.tile(cos_h, (1, N_KV_HEADS)), ones_v], axis=1)            # (S, 128)
    sin_tab = jnp.concatenate(
        [jnp.tile(sin_h, (1, N_HEADS)) * q_scale,
         jnp.tile(sin_h, (1, N_KV_HEADS)), zeros_v], axis=1)           # (S, 128)
    return cos_tab, sin_tab, cos, sin


# ------------------------- pure-JAX reference (for checking) -------------------------


def apply_rotary_ref(x, cos, sin):
    B, S, H, hd = x.shape
    xp = x.astype(jnp.float32).reshape(B, S, H, hd // 2, 2)
    xr, xi = xp[..., 0], xp[..., 1]
    c = cos[None, :, None, :]
    s = sin[None, :, None, :]
    out = jnp.stack([xr * c - xi * s, xr * s + xi * c], axis=-1).reshape(B, S, H, hd)
    return out.astype(x.dtype)


def repeat_kv(x, rep):
    B, T, KVH, hd = x.shape
    return jnp.broadcast_to(
        x[:, :, :, None, :], (B, T, KVH, rep, hd)
    ).reshape(B, T, KVH * rep, hd)


def ref_encoder_block(params, x, start_pos, cos, sin, k_cache, v_cache):
    def rms(a, w):
        ms = jnp.mean(a.astype(jnp.float32) ** 2, axis=-1, keepdims=True)
        return w * (a * lax.rsqrt(ms + NORM_EPS))

    B, S, D = x.shape
    xn = rms(x.reshape(B * S, D), params["attn_norm_w"])
    xq = (xn @ params["wq_t"]).reshape(B, S, N_HEADS, HEAD_DIM)
    xk = (xn @ params["wk_t"]).reshape(B, S, N_KV_HEADS, HEAD_DIM)
    xv = (xn @ params["wv_t"]).reshape(B, S, N_KV_HEADS, HEAD_DIM)
    xq = apply_rotary_ref(xq, cos, sin)
    xk = apply_rotary_ref(xk, cos, sin)
    k_cache = lax.dynamic_update_slice(k_cache, xk, (0, start_pos, 0, 0))
    v_cache = lax.dynamic_update_slice(v_cache, xv, (0, start_pos, 0, 0))
    T = start_pos + S
    keys = repeat_kv(k_cache[:B, :T], N_REP).transpose(0, 2, 1, 3)
    vals = repeat_kv(v_cache[:B, :T], N_REP).transpose(0, 2, 1, 3)
    q = xq.transpose(0, 2, 1, 3)
    scores = jnp.einsum("bhqd,bhkd->bhqk", q, keys) / math.sqrt(HEAD_DIM)
    scores = jax.nn.softmax(scores.astype(jnp.float32), axis=-1)
    out = jnp.einsum("bhqk,bhkd->bhqd", scores, vals)
    out = out.transpose(0, 2, 1, 3).reshape(B * S, D)
    attn_out = (out @ params["wo_t"]).reshape(B, S, D)
    h = x + attn_out
    hn = rms(h.reshape(B * S, D), params["ffn_norm_w"])
    h1 = hn @ params["w1_t"]
    h3 = hn @ params["w3_t"]
    ff = ((h1 * jax.nn.sigmoid(h1)) * h3) @ params["w2_t"]
    return h + ff.reshape(B, S, D), k_cache, v_cache


# ----------------------------------- main ---------------------------------------

if __name__ == "__main__":
    key = jax.random.PRNGKey(0)
    ks = jax.random.split(key, 10)
    scale = 0.05
    params = {
        "attn_norm_w": jnp.ones((1, DIM), jnp.float32),
        "ffn_norm_w": jnp.ones((1, DIM), jnp.float32),
        "wq_t": scale * jax.random.normal(ks[0], (DIM, N_HEADS * HEAD_DIM), jnp.float32),
        "wk_t": scale * jax.random.normal(ks[1], (DIM, N_KV_HEADS * HEAD_DIM), jnp.float32),
        "wv_t": scale * jax.random.normal(ks[2], (DIM, N_KV_HEADS * HEAD_DIM), jnp.float32),
        "wo_t": scale * jax.random.normal(ks[3], (N_HEADS * HEAD_DIM, DIM), jnp.float32),
        "w1_t": scale * jax.random.normal(ks[4], (DIM, HIDDEN_DIM), jnp.float32),
        "w3_t": scale * jax.random.normal(ks[5], (DIM, HIDDEN_DIM), jnp.float32),
        "w2_t": scale * jax.random.normal(ks[6], (HIDDEN_DIM, DIM), jnp.float32),
    }

    B, S = 2, 8
    start_pos = 8                      # static, chunk-aligned (and 8-sublane aligned)
    x = jax.random.normal(ks[7], (B, S, DIM), jnp.float32)
    # non-trivial pre-existing cache contents to exercise the in-place update path
    k_cache = 0.5 * jax.random.normal(
        ks[8], (MAX_BATCH, MAX_SEQ, N_KV_HEADS, HEAD_DIM), jnp.float32)
    v_cache = 0.5 * jax.random.normal(
        ks[9], (MAX_BATCH, MAX_SEQ, N_KV_HEADS, HEAD_DIM), jnp.float32)

    cos_tab, sin_tab, cos, sin = build_rope_tables(start_pos, S)
    wqkvr_bf16, wo_bf16, w13_bf16, w2_bf16 = build_fused_weights(params)

    # pure-JAX f32 reference (computed first; it only reads the caches)
    ref_out, ref_kc, ref_vc = ref_encoder_block(
        params, x, start_pos, cos, sin, k_cache, v_cache)

    out, kc_new, vc_new = encoder_block(
        x, cos_tab, sin_tab, params["attn_norm_w"], params["ffn_norm_w"],
        wqkvr_bf16, wo_bf16, w13_bf16, w2_bf16, k_cache, v_cache, start_pos)
    out = jax.block_until_ready(out)

    assert out.shape == (B, S, DIM)
    # tolerance covers bf16 MXU operands + approx EUP reciprocal (SiLU) vs. f32 reference
    TOL = dict(atol=2e-2, rtol=2e-2)
    assert jnp.allclose(out, ref_out, **TOL), "output mismatch vs reference"
    assert jnp.allclose(kc_new, ref_kc, **TOL), "k_cache mismatch vs reference"
    assert jnp.allclose(vc_new, ref_vc, **TOL), "v_cache mismatch vs reference"

    print("KERNEL_OK")
</pallas_src>

<mosaic_0001>
module attributes {stable_mosaic.version = 11 : i64} {
  func.func @_encoder_block_kernel(%arg0: i32, %arg1: memref<2x8x64xf32, #tpu.memory_space<vmem>>, %arg2: memref<8x128xf32, #tpu.memory_space<vmem>>, %arg3: memref<8x128xf32, #tpu.memory_space<vmem>>, %arg4: memref<1x64xf32, #tpu.memory_space<vmem>>, %arg5: memref<1x64xf32, #tpu.memory_space<vmem>>, %arg6: memref<64x256xbf16, #tpu.memory_space<vmem>>, %arg7: memref<64x64xbf16, #tpu.memory_space<vmem>>, %arg8: memref<64x384xbf16, #tpu.memory_space<vmem>>, %arg9: memref<192x64xbf16, #tpu.memory_space<vmem>>, %arg10: memref<2x8x32xf32, #tpu.memory_space<vmem>>, %arg11: memref<2x8x32xf32, #tpu.memory_space<vmem>>, %arg12: memref<2x8x64xf32, #tpu.memory_space<vmem>>, %arg13: memref<2x8x32xf32, #tpu.memory_space<vmem>>, %arg14: memref<2x8x32xf32, #tpu.memory_space<vmem>>) attributes {dimension_semantics = [#tpu.dimension_semantics<arbitrary>], iteration_bounds = array<i64: 1>, scalar_prefetch = 0 : i64, scratch_operands = 0 : i64, tpu.core_type = #tpu.core_type<tc>, window_params = [{pipeline_mode = #tpu.pipeline_mode<synchronous>, transform_indices = @transform_0, window_bounds = array<i64: 2, 8, 64>}, {pipeline_mode = #tpu.pipeline_mode<synchronous>, transform_indices = @transform_1, window_bounds = array<i64: 8, 128>}, {pipeline_mode = #tpu.pipeline_mode<synchronous>, transform_indices = @transform_2, window_bounds = array<i64: 8, 128>}, {pipeline_mode = #tpu.pipeline_mode<synchronous>, transform_indices = @transform_3, window_bounds = array<i64: 1, 64>}, {pipeline_mode = #tpu.pipeline_mode<synchronous>, transform_indices = @transform_4, window_bounds = array<i64: 1, 64>}, {pipeline_mode = #tpu.pipeline_mode<synchronous>, transform_indices = @transform_5, window_bounds = array<i64: 64, 256>}, {pipeline_mode = #tpu.pipeline_mode<synchronous>, transform_indices = @transform_6, window_bounds = array<i64: 64, 64>}, {pipeline_mode = #tpu.pipeline_mode<synchronous>, transform_indices = @transform_7, window_bounds = array<i64: 64, 384>}, {pipeline_mode = #tpu.pipeline_mode<synchronous>, transform_indices = @transform_8, window_bounds = array<i64: 192, 64>}, {transform_indices = @transform_9, window_bounds = array<i64: 2, 8, 32>}, {transform_indices = @transform_10, window_bounds = array<i64: 2, 8, 32>}, {pipeline_mode = #tpu.pipeline_mode<synchronous>, transform_indices = @transform_11, window_bounds = array<i64: 2, 8, 64>}, {transform_indices = @transform_12, window_bounds = array<i64: 2, 8, 32>}, {transform_indices = @transform_13, window_bounds = array<i64: 2, 8, 32>}]} {
    %c0 = arith.constant 0 : index
    %c0_0 = arith.constant 0 : index
    %c0_1 = arith.constant 0 : index
    %0 = vector.load %arg1[%c0, %c0_0, %c0_1] : memref<2x8x64xf32, #tpu.memory_space<vmem>>, vector<2x8x64xf32>
    %1 = vector.shape_cast %0 : vector<2x8x64xf32> to vector<16x64xf32>
    %2 = arith.mulf %1, %1 : vector<16x64xf32>
    %cst = arith.constant dense<0.000000e+00> : vector<16xf32>
    %3 = vector.multi_reduction <add>, %2, %cst [1] : vector<16x64xf32> to vector<16xf32>
    %4 = vector.shape_cast %3 : vector<16xf32> to vector<16x1xf32>
    %cst_2 = arith.constant 6.400000e+01 : f32
    %5 = vector.broadcast %cst_2 : f32 to vector<16x1xf32>
    %6 = arith.divf %4, %5 : vector<16x1xf32>
    %c0_3 = arith.constant 0 : index
    %c0_4 = arith.constant 0 : index
    %7 = vector.load %arg4[%c0_3, %c0_4] : memref<1x64xf32, #tpu.memory_space<vmem>>, vector<1x64xf32>
    %cst_5 = arith.constant 9.99999997E-7 : f32
    %8 = vector.broadcast %cst_5 : f32 to vector<16x1xf32>
    %9 = arith.addf %6, %8 : vector<16x1xf32>
    %10 = math.rsqrt %9 : vector<16x1xf32>
    %11 = vector.broadcast %10 : vector<16x1xf32> to vector<16x64xf32>
    %12 = arith.mulf %1, %11 : vector<16x64xf32>
    %13 = vector.broadcast %7 : vector<1x64xf32> to vector<16x64xf32>
    %14 = arith.mulf %13, %12 : vector<16x64xf32>
    %15 = arith.truncf %14 : vector<16x64xf32> to vector<16x64xbf16>
    %c0_6 = arith.constant 0 : index
    %c0_7 = arith.constant 0 : index
    %16 = vector.load %arg6[%c0_6, %c0_7] : memref<64x256xbf16, #tpu.memory_space<vmem>>, vector<64x256xbf16>
    %cst_8 = arith.constant dense<0.000000e+00> : vector<16x256xf32>
    %17 = tpu.matmul %15, %16, %cst_8 {dimension_numbers = #tpu.dot_dimension_numbers<[1], [0], [0], [1], [0, 0, 1, 1], [], []>} : vector<16x64xbf16>, vector<64x256xbf16>, vector<16x256xf32> -> vector<16x256xf32>
    %18 = vector.extract_strided_slice %17 {offsets = [0, 0], sizes = [16, 128], strides = [1, 1]} : vector<16x256xf32> to vector<16x128xf32>
    %19 = vector.shape_cast %18 : vector<16x128xf32> to vector<2x8x128xf32>
    %20 = vector.extract_strided_slice %17 {offsets = [0, 128], sizes = [16, 128], strides = [1, 1]} : vector<16x256xf32> to vector<16x128xf32>
    %21 = vector.shape_cast %20 : vector<16x128xf32> to vector<2x8x128xf32>
    %c0_9 = arith.constant 0 : index
    %c0_10 = arith.constant 0 : index
    %22 = vector.load %arg2[%c0_9, %c0_10] : memref<8x128xf32, #tpu.memory_space<vmem>>, vector<8x128xf32>
    %23 = vector.shape_cast %22 : vector<8x128xf32> to vector<1x8x128xf32>
    %24 = vector.broadcast %23 : vector<1x8x128xf32> to vector<2x8x128xf32>
    %25 = arith.mulf %19, %24 : vector<2x8x128xf32>
    %c0_11 = arith.constant 0 : index
    %c0_12 = arith.constant 0 : index
    %26 = vector.load %arg3[%c0_11, %c0_12] : memref<8x128xf32, #tpu.memory_space<vmem>>, vector<8x128xf32>
    %27 = vector.shape_cast %26 : vector<8x128xf32> to vector<1x8x128xf32>
    %28 = vector.broadcast %27 : vector<1x8x128xf32> to vector<2x8x128xf32>
    %29 = arith.mulf %21, %28 : vector<2x8x128xf32>
    %30 = arith.addf %25, %29 : vector<2x8x128xf32>
    %31 = vector.extract_strided_slice %30 {offsets = [0, 0, 0], sizes = [2, 8, 64], strides = [1, 1, 1]} : vector<2x8x128xf32> to vector<2x8x64xf32>
    %32 = vector.extract_strided_slice %30 {offsets = [0, 0, 64], sizes = [2, 8, 32], strides = [1, 1, 1]} : vector<2x8x128xf32> to vector<2x8x32xf32>
    %33 = vector.extract_strided_slice %30 {offsets = [0, 0, 96], sizes = [2, 8, 32], strides = [1, 1, 1]} : vector<2x8x128xf32> to vector<2x8x32xf32>
    %c0_13 = arith.constant 0 : index
    %c0_14 = arith.constant 0 : index
    %c0_15 = arith.constant 0 : index
    %34 = vector.load %arg13[%c0_13, %c0_14, %c0_15] : memref<2x8x32xf32, #tpu.memory_space<vmem>>, vector<2x8x32xf32>
    tpu.vector_store %arg13[%c0_13, %c0_14, %c0_15], %32 {strides = array<i32>} : memref<2x8x32xf32, #tpu.memory_space<vmem>>, vector<2x8x32xf32>,
    %c0_16 = arith.constant 0 : index
    %c0_17 = arith.constant 0 : index
    %c0_18 = arith.constant 0 : index
    %35 = vector.load %arg14[%c0_16, %c0_17, %c0_18] : memref<2x8x32xf32, #tpu.memory_space<vmem>>, vector<2x8x32xf32>
    tpu.vector_store %arg14[%c0_16, %c0_17, %c0_18], %33 {strides = array<i32>} : memref<2x8x32xf32, #tpu.memory_space<vmem>>, vector<2x8x32xf32>,
    %c0_19 = arith.constant 0 : index
    %c0_20 = arith.constant 0 : index
    %36 = vector.load %arg7[%c0_19, %c0_20] : memref<64x64xbf16, #tpu.memory_space<vmem>>, vector<64x64xbf16>
    %c0_21 = arith.constant 0 : index
    %c0_22 = arith.constant 0 : index
    %c0_23 = arith.constant 0 : index
    %37 = vector.load %arg10[%c0_21, %c0_22, %c0_23] : memref<2x8x32xf32, #tpu.memory_space<vmem>>, vector<1x8x32xf32>
    %38 = vector.shape_cast %37 : vector<1x8x32xf32> to vector<8x32xf32>
    %39 = vector.extract_strided_slice %32 {offsets = [0, 0, 0], sizes = [1, 8, 32], strides = [1, 1, 1]} : vector<2x8x32xf32> to vector<1x8x32xf32>
    %40 = vector.shape_cast %39 : vector<1x8x32xf32> to vector<8x32xf32>
    %41 = tpu.concatenate %38, %40 in 0 : vector<8x32xf32>, vector<8x32xf32> -> vector<16x32xf32>
    %c0_24 = arith.constant 0 : index
    %c0_25 = arith.constant 0 : index
    %c0_26 = arith.constant 0 : index
    %42 = vector.load %arg11[%c0_24, %c0_25, %c0_26] : memref<2x8x32xf32, #tpu.memory_space<vmem>>, vector<1x8x32xf32>
    %43 = vector.shape_cast %42 : vector<1x8x32xf32> to vector<8x32xf32>
    %44 = vector.extract_strided_slice %33 {offsets = [0, 0, 0], sizes = [1, 8, 32], strides = [1, 1, 1]} : vector<2x8x32xf32> to vector<1x8x32xf32>
    %45 = vector.shape_cast %44 : vector<1x8x32xf32> to vector<8x32xf32>
    %46 = tpu.concatenate %43, %45 in 0 : vector<8x32xf32>, vector<8x32xf32> -> vector<16x32xf32>
    %47 = arith.truncf %41 : vector<16x32xf32> to vector<16x32xbf16>
    %48 = arith.truncf %46 : vector<16x32xf32> to vector<16x32xbf16>
    %49 = vector.extract_strided_slice %31 {offsets = [0, 0, 0], sizes = [1, 8, 64], strides = [1, 1, 1]} : vector<2x8x64xf32> to vector<1x8x64xf32>
    %50 = vector.shape_cast %49 : vector<1x8x64xf32> to vector<8x64xf32>
    %51 = arith.truncf %50 : vector<8x64xf32> to vector<8x64xbf16>
    %52 = vector.extract_strided_slice %47 {offsets = [0, 0], sizes = [16, 16], strides = [1, 1]} : vector<16x32xbf16> to vector<16x16xbf16>
    %53 = vector.extract_strided_slice %48 {offsets = [0, 0], sizes = [16, 16], strides = [1, 1]} : vector<16x32xbf16> to vector<16x16xbf16>
    %54 = vector.extract_strided_slice %51 {offsets = [0, 0], sizes = [8, 16], strides = [1, 1]} : vector<8x64xbf16> to vector<8x16xbf16>
    %55 = vector.extract_strided_slice %51 {offsets = [0, 16], sizes = [8, 16], strides = [1, 1]} : vector<8x64xbf16> to vector<8x16xbf16>
    %56 = tpu.concatenate %54, %55 in 0 : vector<8x16xbf16>, vector<8x16xbf16> -> vector<16x16xbf16>
    %cst_27 = arith.constant dense<0.000000e+00> : vector<16x16xf32>
    %57 = tpu.matmul %56, %52, %cst_27 {dimension_numbers = #tpu.dot_dimension_numbers<[1], [1], [0], [0], [0, 0, 1, 0], [], []>} : vector<16x16xbf16>, vector<16x16xbf16>, vector<16x16xf32> -> vector<16x16xf32>
    %cst_28 = arith.constant dense<0xFF800000> : vector<16xf32>
    %58 = vector.multi_reduction <maximumf>, %57, %cst_28 [1] : vector<16x16xf32> to vector<16xf32>
    %59 = vector.shape_cast %58 : vector<16xf32> to vector<16x1xf32>
    %60 = vector.broadcast %59 : vector<16x1xf32> to vector<16x16xf32>
    %61 = arith.subf %57, %60 : vector<16x16xf32>
    %62 = math.exp %61 : vector<16x16xf32>
    %cst_29 = arith.constant dense<0.000000e+00> : vector<16xf32>
    %63 = vector.multi_reduction <add>, %62, %cst_29 [1] : vector<16x16xf32> to vector<16xf32>
    %64 = vector.shape_cast %63 : vector<16xf32> to vector<16x1xf32>
    %65 = vector.broadcast %64 : vector<16x1xf32> to vector<16x16xf32>
    %66 = arith.divf %62, %65 : vector<16x16xf32>
    %67 = arith.truncf %66 : vector<16x16xf32> to vector<16x16xbf16>
    %cst_30 = arith.constant dense<0.000000e+00> : vector<16x16xf32>
    %68 = tpu.matmul %67, %53, %cst_30 {dimension_numbers = #tpu.dot_dimension_numbers<[1], [0], [0], [1], [0, 0, 1, 1], [], []>} : vector<16x16xbf16>, vector<16x16xbf16>, vector<16x16xf32> -> vector<16x16xf32>
    %69 = vector.extract_strided_slice %68 {offsets = [0, 0], sizes = [8, 16], strides = [1, 1]} : vector<16x16xf32> to vector<8x16xf32>
    %70 = vector.extract_strided_slice %68 {offsets = [8, 0], sizes = [8, 16], strides = [1, 1]} : vector<16x16xf32> to vector<8x16xf32>
    %71 = vector.extract_strided_slice %47 {offsets = [0, 16], sizes = [16, 16], strides = [1, 1]} : vector<16x32xbf16> to vector<16x16xbf16>
    %72 = vector.extract_strided_slice %48 {offsets = [0, 16], sizes = [16, 16], strides = [1, 1]} : vector<16x32xbf16> to vector<16x16xbf16>
    %73 = vector.extract_strided_slice %51 {offsets = [0, 32], sizes = [8, 16], strides = [1, 1]} : vector<8x64xbf16> to vector<8x16xbf16>
    %74 = vector.extract_strided_slice %51 {offsets = [0, 48], sizes = [8, 16], strides = [1, 1]} : vector<8x64xbf16> to vector<8x16xbf16>
    %75 = tpu.concatenate %73, %74 in 0 : vector<8x16xbf16>, vector<8x16xbf16> -> vector<16x16xbf16>
    %cst_31 = arith.constant dense<0.000000e+00> : vector<16x16xf32>
    %76 = tpu.matmul %75, %71, %cst_31 {dimension_numbers = #tpu.dot_dimension_numbers<[1], [1], [0], [0], [0, 0, 1, 0], [], []>} : vector<16x16xbf16>, vector<16x16xbf16>, vector<16x16xf32> -> vector<16x16xf32>
    %cst_32 = arith.constant dense<0xFF800000> : vector<16xf32>
    %77 = vector.multi_reduction <maximumf>, %76, %cst_32 [1] : vector<16x16xf32> to vector<16xf32>
    %78 = vector.shape_cast %77 : vector<16xf32> to vector<16x1xf32>
    %79 = vector.broadcast %78 : vector<16x1xf32> to vector<16x16xf32>
    %80 = arith.subf %76, %79 : vector<16x16xf32>
    %81 = math.exp %80 : vector<16x16xf32>
    %cst_33 = arith.constant dense<0.000000e+00> : vector<16xf32>
    %82 = vector.multi_reduction <add>, %81, %cst_33 [1] : vector<16x16xf32> to vector<16xf32>
    %83 = vector.shape_cast %82 : vector<16xf32> to vector<16x1xf32>
    %84 = vector.broadcast %83 : vector<16x1xf32> to vector<16x16xf32>
    %85 = arith.divf %81, %84 : vector<16x16xf32>
    %86 = arith.truncf %85 : vector<16x16xf32> to vector<16x16xbf16>
    %cst_34 = arith.constant dense<0.000000e+00> : vector<16x16xf32>
    %87 = tpu.matmul %86, %72, %cst_34 {dimension_numbers = #tpu.dot_dimension_numbers<[1], [0], [0], [1], [0, 0, 1, 1], [], []>} : vector<16x16xbf16>, vector<16x16xbf16>, vector<16x16xf32> -> vector<16x16xf32>
    %88 = vector.extract_strided_slice %87 {offsets = [0, 0], sizes = [8, 16], strides = [1, 1]} : vector<16x16xf32> to vector<8x16xf32>
    %89 = vector.extract_strided_slice %87 {offsets = [8, 0], sizes = [8, 16], strides = [1, 1]} : vector<16x16xf32> to vector<8x16xf32>
    %c1 = arith.constant 1 : index
    %c0_35 = arith.constant 0 : index
    %c0_36 = arith.constant 0 : index
    %90 = vector.load %arg10[%c1, %c0_35, %c0_36] : memref<2x8x32xf32, #tpu.memory_space<vmem>>, vector<1x8x32xf32>
    %91 = vector.shape_cast %90 : vector<1x8x32xf32> to vector<8x32xf32>
    %92 = vector.extract_strided_slice %32 {offsets = [1, 0, 0], sizes = [1, 8, 32], strides = [1, 1, 1]} : vector<2x8x32xf32> to vector<1x8x32xf32>
    %93 = vector.shape_cast %92 : vector<1x8x32xf32> to vector<8x32xf32>
    %94 = tpu.concatenate %91, %93 in 0 : vector<8x32xf32>, vector<8x32xf32> -> vector<16x32xf32>
    %c1_37 = arith.constant 1 : index
    %c0_38 = arith.constant 0 : index
    %c0_39 = arith.constant 0 : index
    %95 = vector.load %arg11[%c1_37, %c0_38, %c0_39] : memref<2x8x32xf32, #tpu.memory_space<vmem>>, vector<1x8x32xf32>
    %96 = vector.shape_cast %95 : vector<1x8x32xf32> to vector<8x32xf32>
    %97 = vector.extract_strided_slice %33 {offsets = [1, 0, 0], sizes = [1, 8, 32], strides = [1, 1, 1]} : vector<2x8x32xf32> to vector<1x8x32xf32>
    %98 = vector.shape_cast %97 : vector<1x8x32xf32> to vector<8x32xf32>
    %99 = tpu.concatenate %96, %98 in 0 : vector<8x32xf32>, vector<8x32xf32> -> vector<16x32xf32>
    %100 = arith.truncf %94 : vector<16x32xf32> to vector<16x32xbf16>
    %101 = arith.truncf %99 : vector<16x32xf32> to vector<16x32xbf16>
    %102 = vector.extract_strided_slice %31 {offsets = [1, 0, 0], sizes = [1, 8, 64], strides = [1, 1, 1]} : vector<2x8x64xf32> to vector<1x8x64xf32>
    %103 = vector.shape_cast %102 : vector<1x8x64xf32> to vector<8x64xf32>
    %104 = arith.truncf %103 : vector<8x64xf32> to vector<8x64xbf16>
    %105 = vector.extract_strided_slice %100 {offsets = [0, 0], sizes = [16, 16], strides = [1, 1]} : vector<16x32xbf16> to vector<16x16xbf16>
    %106 = vector.extract_strided_slice %101 {offsets = [0, 0], sizes = [16, 16], strides = [1, 1]} : vector<16x32xbf16> to vector<16x16xbf16>
    %107 = vector.extract_strided_slice %104 {offsets = [0, 0], sizes = [8, 16], strides = [1, 1]} : vector<8x64xbf16> to vector<8x16xbf16>
    %108 = vector.extract_strided_slice %104 {offsets = [0, 16], sizes = [8, 16], strides = [1, 1]} : vector<8x64xbf16> to vector<8x16xbf16>
    %109 = tpu.concatenate %107, %108 in 0 : vector<8x16xbf16>, vector<8x16xbf16> -> vector<16x16xbf16>
    %cst_40 = arith.constant dense<0.000000e+00> : vector<16x16xf32>
    %110 = tpu.matmul %109, %105, %cst_40 {dimension_numbers = #tpu.dot_dimension_numbers<[1], [1], [0], [0], [0, 0, 1, 0], [], []>} : vector<16x16xbf16>, vector<16x16xbf16>, vector<16x16xf32> -> vector<16x16xf32>
    %cst_41 = arith.constant dense<0xFF800000> : vector<16xf32>
    %111 = vector.multi_reduction <maximumf>, %110, %cst_41 [1] : vector<16x16xf32> to vector<16xf32>
    %112 = vector.shape_cast %111 : vector<16xf32> to vector<16x1xf32>
    %113 = vector.broadcast %112 : vector<16x1xf32> to vector<16x16xf32>
    %114 = arith.subf %110, %113 : vector<16x16xf32>
    %115 = math.exp %114 : vector<16x16xf32>
    %cst_42 = arith.constant dense<0.000000e+00> : vector<16xf32>
    %116 = vector.multi_reduction <add>, %115, %cst_42 [1] : vector<16x16xf32> to vector<16xf32>
    %117 = vector.shape_cast %116 : vector<16xf32> to vector<16x1xf32>
    %118 = vector.broadcast %117 : vector<16x1xf32> to vector<16x16xf32>
    %119 = arith.divf %115, %118 : vector<16x16xf32>
    %120 = arith.truncf %119 : vector<16x16xf32> to vector<16x16xbf16>
    %cst_43 = arith.constant dense<0.000000e+00> : vector<16x16xf32>
    %121 = tpu.matmul %120, %106, %cst_43 {dimension_numbers = #tpu.dot_dimension_numbers<[1], [0], [0], [1], [0, 0, 1, 1], [], []>} : vector<16x16xbf16>, vector<16x16xbf16>, vector<16x16xf32> -> vector<16x16xf32>
    %122 = vector.extract_strided_slice %121 {offsets = [0, 0], sizes = [8, 16], strides = [1, 1]} : vector<16x16xf32> to vector<8x16xf32>
    %123 = vector.extract_strided_slice %121 {offsets = [8, 0], sizes = [8, 16], strides = [1, 1]} : vector<16x16xf32> to vector<8x16xf32>
    %124 = vector.extract_strided_slice %100 {offsets = [0, 16], sizes = [16, 16], strides = [1, 1]} : vector<16x32xbf16> to vector<16x16xbf16>
    %125 = vector.extract_strided_slice %101 {offsets = [0, 16], sizes = [16, 16], strides = [1, 1]} : vector<16x32xbf16> to vector<16x16xbf16>
    %126 = vector.extract_strided_slice %104 {offsets = [0, 32], sizes = [8, 16], strides = [1, 1]} : vector<8x64xbf16> to vector<8x16xbf16>
    %127 = vector.extract_strided_slice %104 {offsets = [0, 48], sizes = [8, 16], strides = [1, 1]} : vector<8x64xbf16> to vector<8x16xbf16>
    %128 = tpu.concatenate %126, %127 in 0 : vector<8x16xbf16>, vector<8x16xbf16> -> vector<16x16xbf16>
    %cst_44 = arith.constant dense<0.000000e+00> : vector<16x16xf32>
    %129 = tpu.matmul %128, %124, %cst_44 {dimension_numbers = #tpu.dot_dimension_numbers<[1], [1], [0], [0], [0, 0, 1, 0], [], []>} : vector<16x16xbf16>, vector<16x16xbf16>, vector<16x16xf32> -> vector<16x16xf32>
    %cst_45 = arith.constant dense<0xFF800000> : vector<16xf32>
    %130 = vector.multi_reduction <maximumf>, %129, %cst_45 [1] : vector<16x16xf32> to vector<16xf32>
    %131 = vector.shape_cast %130 : vector<16xf32> to vector<16x1xf32>
    %132 = vector.broadcast %131 : vector<16x1xf32> to vector<16x16xf32>
    %133 = arith.subf %129, %132 : vector<16x16xf32>
    %134 = math.exp %133 : vector<16x16xf32>
    %cst_46 = arith.constant dense<0.000000e+00> : vector<16xf32>
    %135 = vector.multi_reduction <add>, %134, %cst_46 [1] : vector<16x16xf32> to vector<16xf32>
    %136 = vector.shape_cast %135 : vector<16xf32> to vector<16x1xf32>
    %137 = vector.broadcast %136 : vector<16x1xf32> to vector<16x16xf32>
    %138 = arith.divf %134, %137 : vector<16x16xf32>
    %139 = arith.truncf %138 : vector<16x16xf32> to vector<16x16xbf16>
    %cst_47 = arith.constant dense<0.000000e+00> : vector<16x16xf32>
    %140 = tpu.matmul %139, %125, %cst_47 {dimension_numbers = #tpu.dot_dimension_numbers<[1], [0], [0], [1], [0, 0, 1, 1], [], []>} : vector<16x16xbf16>, vector<16x16xbf16>, vector<16x16xf32> -> vector<16x16xf32>
    %141 = vector.extract_strided_slice %140 {offsets = [0, 0], sizes = [8, 16], strides = [1, 1]} : vector<16x16xf32> to vector<8x16xf32>
    %142 = vector.extract_strided_slice %140 {offsets = [8, 0], sizes = [8, 16], strides = [1, 1]} : vector<16x16xf32> to vector<8x16xf32>
    %143 = tpu.concatenate %69, %122 in 0 : vector<8x16xf32>, vector<8x16xf32> -> vector<16x16xf32>
    %144 = arith.truncf %143 : vector<16x16xf32> to vector<16x16xbf16>
    %145 = vector.extract_strided_slice %36 {offsets = [0, 0], sizes = [16, 64], strides = [1, 1]} : vector<64x64xbf16> to vector<16x64xbf16>
    %cst_48 = arith.constant dense<0.000000e+00> : vector<16x64xf32>
    %146 = tpu.matmul %144, %145, %cst_48 {dimension_numbers = #tpu.dot_dimension_numbers<[1], [0], [0], [1], [0, 0, 1, 1], [], []>} : vector<16x16xbf16>, vector<16x64xbf16>, vector<16x64xf32> -> vector<16x64xf32>
    %147 = arith.addf %1, %146 : vector<16x64xf32>
    %148 = tpu.concatenate %70, %123 in 0 : vector<8x16xf32>, vector<8x16xf32> -> vector<16x16xf32>
    %149 = arith.truncf %148 : vector<16x16xf32> to vector<16x16xbf16>
    %150 = vector.extract_strided_slice %36 {offsets = [16, 0], sizes = [16, 64], strides = [1, 1]} : vector<64x64xbf16> to vector<16x64xbf16>
    %cst_49 = arith.constant dense<0.000000e+00> : vector<16x64xf32>
    %151 = tpu.matmul %149, %150, %cst_49 {dimension_numbers = #tpu.dot_dimension_numbers<[1], [0], [0], [1], [0, 0, 1, 1], [], []>} : vector<16x16xbf16>, vector<16x64xbf16>, vector<16x64xf32> -> vector<16x64xf32>
    %152 = arith.addf %147, %151 : vector<16x64xf32>
    %153 = tpu.concatenate %88, %141 in 0 : vector<8x16xf32>, vector<8x16xf32> -> vector<16x16xf32>
    %154 = arith.truncf %153 : vector<16x16xf32> to vector<16x16xbf16>
    %155 = vector.extract_strided_slice %36 {offsets = [32, 0], sizes = [16, 64], strides = [1, 1]} : vector<64x64xbf16> to vector<16x64xbf16>
    %cst_50 = arith.constant dense<0.000000e+00> : vector<16x64xf32>
    %156 = tpu.matmul %154, %155, %cst_50 {dimension_numbers = #tpu.dot_dimension_numbers<[1], [0], [0], [1], [0, 0, 1, 1], [], []>} : vector<16x16xbf16>, vector<16x64xbf16>, vector<16x64xf32> -> vector<16x64xf32>
    %157 = arith.addf %152, %156 : vector<16x64xf32>
    %158 = tpu.concatenate %89, %142 in 0 : vector<8x16xf32>, vector<8x16xf32> -> vector<16x16xf32>
    %159 = arith.truncf %158 : vector<16x16xf32> to vector<16x16xbf16>
    %160 = vector.extract_strided_slice %36 {offsets = [48, 0], sizes = [16, 64], strides = [1, 1]} : vector<64x64xbf16> to vector<16x64xbf16>
    %cst_51 = arith.constant dense<0.000000e+00> : vector<16x64xf32>
    %161 = tpu.matmul %159, %160, %cst_51 {dimension_numbers = #tpu.dot_dimension_numbers<[1], [0], [0], [1], [0, 0, 1, 1], [], []>} : vector<16x16xbf16>, vector<16x64xbf16>, vector<16x64xf32> -> vector<16x64xf32>
    %162 = arith.addf %157, %161 : vector<16x64xf32>
    %163 = arith.mulf %162, %162 : vector<16x64xf32>
    %cst_52 = arith.constant dense<0.000000e+00> : vector<16xf32>
    %164 = vector.multi_reduction <add>, %163, %cst_52 [1] : vector<16x64xf32> to vector<16xf32>
    %165 = vector.shape_cast %164 : vector<16xf32> to vector<16x1xf32>
    %cst_53 = arith.constant 6.400000e+01 : f32
    %166 = vector.broadcast %cst_53 : f32 to vector<16x1xf32>
    %167 = arith.divf %165, %166 : vector<16x1xf32>
    %c0_54 = arith.constant 0 : index
    %c0_55 = arith.constant 0 : index
    %168 = vector.load %arg5[%c0_54, %c0_55] : memref<1x64xf32, #tpu.memory_space<vmem>>, vector<1x64xf32>
    %cst_56 = arith.constant 9.99999997E-7 : f32
    %169 = vector.broadcast %cst_56 : f32 to vector<16x1xf32>
    %170 = arith.addf %167, %169 : vector<16x1xf32>
    %171 = math.rsqrt %170 : vector<16x1xf32>
    %172 = vector.broadcast %171 : vector<16x1xf32> to vector<16x64xf32>
    %173 = arith.mulf %162, %172 : vector<16x64xf32>
    %174 = vector.broadcast %168 : vector<1x64xf32> to vector<16x64xf32>
    %175 = arith.mulf %174, %173 : vector<16x64xf32>
    %176 = arith.truncf %175 : vector<16x64xf32> to vector<16x64xbf16>
    %c0_57 = arith.constant 0 : index
    %c0_58 = arith.constant 0 : index
    %177 = vector.load %arg8[%c0_57, %c0_58] : memref<64x384xbf16, #tpu.memory_space<vmem>>, vector<64x384xbf16>
    %cst_59 = arith.constant dense<0.000000e+00> : vector<16x384xf32>
    %178 = tpu.matmul %176, %177, %cst_59 {dimension_numbers = #tpu.dot_dimension_numbers<[1], [0], [0], [1], [0, 0, 1, 1], [], []>} : vector<16x64xbf16>, vector<64x384xbf16>, vector<16x384xf32> -> vector<16x384xf32>
    %179 = vector.extract_strided_slice %178 {offsets = [0, 0], sizes = [16, 192], strides = [1, 1]} : vector<16x384xf32> to vector<16x192xf32>
    %180 = vector.extract_strided_slice %178 {offsets = [0, 192], sizes = [16, 192], strides = [1, 1]} : vector<16x384xf32> to vector<16x192xf32>
    %cst_60 = arith.constant 0.000000e+00 : f32
    %181 = vector.broadcast %cst_60 : f32 to vector<16x192xf32>
    %182 = arith.subf %181, %179 : vector<16x192xf32>
    %183 = math.exp %182 : vector<16x192xf32>
    %cst_61 = arith.constant 1.000000e+00 : f32
    %184 = vector.broadcast %cst_61 : f32 to vector<16x192xf32>
    %185 = arith.addf %184, %183 : vector<16x192xf32>
    %186 = tpu.reciprocal %185 {approx = true} : vector<16x192xf32> -> vector<16x192xf32>
    %187 = arith.mulf %179, %186 : vector<16x192xf32>
    %188 = arith.mulf %187, %180 : vector<16x192xf32>
    %189 = arith.truncf %188 : vector<16x192xf32> to vector<16x192xbf16>
    %c0_62 = arith.constant 0 : index
    %c0_63 = arith.constant 0 : index
    %190 = vector.load %arg9[%c0_62, %c0_63] : memref<192x64xbf16, #tpu.memory_space<vmem>>, vector<192x64xbf16>
    %cst_64 = arith.constant dense<0.000000e+00> : vector<16x64xf32>
    %191 = tpu.matmul %189, %190, %cst_64 {dimension_numbers = #tpu.dot_dimension_numbers<[1], [0], [0], [1], [0, 0, 1, 1], [], []>} : vector<16x192xbf16>, vector<192x64xbf16>, vector<16x64xf32> -> vector<16x64xf32>
    %192 = arith.addf %162, %191 : vector<16x64xf32>
    %193 = vector.shape_cast %192 : vector<16x64xf32> to vector<2x8x64xf32>
    %c0_65 = arith.constant 0 : index
    %c0_66 = arith.constant 0 : index
    %c0_67 = arith.constant 0 : index
    %194 = vector.load %arg12[%c0_65, %c0_66, %c0_67] : memref<2x8x64xf32, #tpu.memory_space<vmem>>, vector<2x8x64xf32>
    tpu.vector_store %arg12[%c0_65, %c0_66, %c0_67], %193 {strides = array<i32>} : memref<2x8x64xf32, #tpu.memory_space<vmem>>, vector<2x8x64xf32>,
    return
  }
  func.func @transform_0(%arg0: i32) -> (i32, i32, i32) {
    %c0_i32 = arith.constant 0 : i32
    %c0_i32_0 = arith.constant 0 : i32
    %c0_i32_1 = arith.constant 0 : i32
    %c0_i32_2 = arith.constant 0 : i32
    return %c0_i32, %c0_i32_0, %c0_i32_1 : i32, i32, i32
  }
  func.func @transform_1(%arg0: i32) -> (i32, i32) {
    %c0_i32 = arith.constant 0 : i32
    %c0_i32_0 = arith.constant 0 : i32
    %c0_i32_1 = arith.constant 0 : i32
    return %c0_i32, %c0_i32_0 : i32, i32
  }
  func.func @transform_2(%arg0: i32) -> (i32, i32) {
    %c0_i32 = arith.constant 0 : i32
    %c0_i32_0 = arith.constant 0 : i32
    %c0_i32_1 = arith.constant 0 : i32
    return %c0_i32, %c0_i32_0 : i32, i32
  }
  func.func @transform_3(%arg0: i32) -> (i32, i32) {
    %c0_i32 = arith.constant 0 : i32
    %c0_i32_0 = arith.constant 0 : i32
    %c0_i32_1 = arith.constant 0 : i32
    return %c0_i32, %c0_i32_0 : i32, i32
  }
  func.func @transform_4(%arg0: i32) -> (i32, i32) {
    %c0_i32 = arith.constant 0 : i32
    %c0_i32_0 = arith.constant 0 : i32
    %c0_i32_1 = arith.constant 0 : i32
    return %c0_i32, %c0_i32_0 : i32, i32
  }
  func.func @transform_5(%arg0: i32) -> (i32, i32) {
    %c0_i32 = arith.constant 0 : i32
    %c0_i32_0 = arith.constant 0 : i32
    %c0_i32_1 = arith.constant 0 : i32
    return %c0_i32, %c0_i32_0 : i32, i32
  }
  func.func @transform_6(%arg0: i32) -> (i32, i32) {
    %c0_i32 = arith.constant 0 : i32
    %c0_i32_0 = arith.constant 0 : i32
    %c0_i32_1 = arith.constant 0 : i32
    return %c0_i32, %c0_i32_0 : i32, i32
  }
  func.func @transform_7(%arg0: i32) -> (i32, i32) {
    %c0_i32 = arith.constant 0 : i32
    %c0_i32_0 = arith.constant 0 : i32
    %c0_i32_1 = arith.constant 0 : i32
    return %c0_i32, %c0_i32_0 : i32, i32
  }
  func.func @transform_8(%arg0: i32) -> (i32, i32) {
    %c0_i32 = arith.constant 0 : i32
    %c0_i32_0 = arith.constant 0 : i32
    %c0_i32_1 = arith.constant 0 : i32
    return %c0_i32, %c0_i32_0 : i32, i32
  }
  func.func @transform_9(%arg0: i32) -> (i32, i32, i32) {
    %c0_i32 = arith.constant 0 : i32
    %c0_i32_0 = arith.constant 0 : i32
    %c0_i32_1 = arith.constant 0 : i32
    %c0_i32_2 = arith.constant 0 : i32
    return %c0_i32, %c0_i32_0, %c0_i32_1 : i32, i32, i32
  }
  func.func @transform_10(%arg0: i32) -> (i32, i32, i32) {
    %c0_i32 = arith.constant 0 : i32
    %c0_i32_0 = arith.constant 0 : i32
    %c0_i32_1 = arith.constant 0 : i32
    %c0_i32_2 = arith.constant 0 : i32
    return %c0_i32, %c0_i32_0, %c0_i32_1 : i32, i32, i32
  }
  func.func @transform_11(%arg0: i32) -> (i32, i32, i32) {
    %c0_i32 = arith.constant 0 : i32
    %c0_i32_0 = arith.constant 0 : i32
    %c0_i32_1 = arith.constant 0 : i32
    %c0_i32_2 = arith.constant 0 : i32
    return %c0_i32, %c0_i32_0, %c0_i32_1 : i32, i32, i32
  }
  func.func @transform_12(%arg0: i32) -> (i32, i32, i32) {
    %c0_i32 = arith.constant 0 : i32
    %c1_i32 = arith.constant 1 : i32
    %c0_i32_0 = arith.constant 0 : i32
    %c0_i32_1 = arith.constant 0 : i32
    return %c0_i32, %c1_i32, %c0_i32_0 : i32, i32, i32
  }
  func.func @transform_13(%arg0: i32) -> (i32, i32, i32) {
    %c0_i32 = arith.constant 0 : i32
    %c1_i32 = arith.constant 1 : i32
    %c0_i32_0 = arith.constant 0 : i32
    %c0_i32_1 = arith.constant 0 : i32
    return %c0_i32, %c1_i32, %c0_i32_0 : i32, i32, i32
  }
}

</mosaic_0001>

<bundles_post_ra>
// kernel: tpu_custom_call.1
= control target key start
LH: loop header
LB: loop body
LE: loop exit
PB: predicated region body
PF: predicated region fallthrough
CT: control target
= control target key end

     0   :  { %19 = vsyncpa [#allocation3], 0  ;;  %s2248_s0 = inlined_call_operand.vmem [shape: f32[2,8,64], index: 0, kind: input, shape index: {}]   ;;  %s2249_s1 = inlined_call_operand.hbm [shape: f32[8,128], index: 1, kind: input, shape index: {}]   ;;  %s2250_s2 = inlined_call_operand.hbm [shape: f32[8,128], index: 2, kind: input, shape index: {}]   ;;  %s2251_s3 = inlined_call_operand.vmem [shape: f32[1,64], index: 3, kind: input, shape index: {}]   ;;  %s2252_s4 = inlined_call_operand.vmem [shape: f32[1,64], index: 4, kind: input, shape index: {}]   ;;  %s2253_s5 = inlined_call_operand.vmem [shape: bf16[64,256], index: 5, kind: input, shape index: {}]   ;;  %s2254_s6 = inlined_call_operand.vmem [shape: bf16[64,64], index: 6, kind: input, shape index: {}]   ;;  %s2255_s7 = inlined_call_operand.vmem [shape: bf16[64,384], index: 7, kind: input, shape index: {}]   ;;  %s2256_s8 = inlined_call_operand.vmem [shape: bf16[192,64], index: 8, kind: input, shape index: {}]   ;;  %s2257_s9 = inlined_call_operand.hbm [shape: f32[2,16,32], index: 9, kind: input, shape index: {}, may-alias: {9,12}]   ;;  %s2258_s10 = inlined_call_operand.hbm [shape: f32[2,16,32], index: 10, kind: input, shape index: {}, may-alias: {10,13}]   ;;  %s2259_s11 = inlined_call_operand.hbm [shape: f32[2,8,64], index: 11, kind: output, shape index: {0}]   ;;  %s2260_s12 = inlined_call_operand.hbm [shape: f32[2,16,32], index: 12, kind: output, shape index: {1}, may-alias: {9,12}]   ;;  %s2261_s13 = inlined_call_operand.hbm [shape: f32[2,16,32], index: 13, kind: output, shape index: {2}, may-alias: {10,13}]  }
   0x1   :  { %20 = vsyncpa [#allocation6], 0 }
   0x2   :  { %21 = vsyncpa [#allocation9], 0 }
   0x3   :  { %22 = vsyncpa [#allocation4], 0 }
   0x4   :  { %23 = vsyncpa [#allocation12], 0  ;;  %s1845_s25 = smov [#allocation5]   ;;  %s1846_s27 = smov [#allocation2]  }
   0x5   :  { %s42_s26 = sshll.u32 %s1845_s25, 4  ;;  %s32_s28 = sshll.u32 %s1846_s27, 4  ;;  %s43_s26 = int_to_ptr.vmem [resolvable:$true] %s42_s26  ;;  %s33_s28 = int_to_ptr.vmem [resolvable:$true] %s32_s28 }
   0x6   :  { %s1697_s29 = scalar_lea.vmem %s43_s26, 128  ;;  %p1702_p1 = scmp.lt.s32.totalorder %s43_s26, %s43_s26 }
   0x7   :  { %p1698_p0 = scmp.ne.s32.totalorder %s43_s26, %s1697_s29  ;;  %p1703_p2 = scmp.lt.s32.totalorder %s1697_s29, %s1697_s29 }
   0x9   :  { %p1704_p3 = por %p1703_p2, %p1702_p1 }
   0xb   :  { %p1705_p4 = pnand %p1704_p3, %p1698_p0 }
   0xd   :  { %1708 = shalt.err (!%p1705_p4)
}
   0xe   :  { %45 = dma.hbm_to_vmem [thread:$0]  %s2250_s2, 128, %s43_s26, [#allocation6]  }
   0xf   :  { %s1717_s15 = scalar_lea.vmem %s33_s28, 128  ;;  %p1722_p6 = scmp.lt.s32.totalorder %s33_s28, %s33_s28 }
  0x10   :  { %p1718_p5 = scmp.ne.s32.totalorder %s33_s28, %s1717_s15  ;;  %p1723_p7 = scmp.lt.s32.totalorder %s1717_s15, %s1717_s15 }
  0x12   :  { %p1724_p8 = por %p1723_p7, %p1722_p6 }
  0x14   :  { %p1725_p9 = pnand %p1724_p8, %p1718_p5 }
  0x16   :  { %1728 = shalt.err (!%p1725_p9)
}
  0x17   :  { %35 = dma.hbm_to_vmem [thread:$0]  %s2249_s1, 128, %s33_s28, [#allocation3]  }
  0x18   :  { %s1847_s18 = smov [#allocation7]  }
  0x19   :  { %s63_s19 = sshll.u32 %s1847_s18, 4  ;;  %s64_s19 = int_to_ptr.vmem [resolvable:$true] %s63_s19 }
  0x1a   :  { %s1737_s20 = scalar_lea.vmem %s64_s19, 256  ;;  %p1742_p11 = scmp.lt.s32.totalorder %s64_s19, %s64_s19 }
  0x1b   :  { %p1738_p10 = scmp.ne.s32.totalorder %s64_s19, %s1737_s20  ;;  %p1743_p12 = scmp.lt.s32.totalorder %s1737_s20, %s1737_s20 }
  0x1d   :  { %p1744_p13 = por %p1743_p12, %p1742_p11 }
  0x1f   :  { %p1745_p0 = pnand %p1744_p13, %p1738_p10 }
  0x21   :  { %1748 = shalt.err (!%p1745_p0)
}
  0x22   :  { %s1848_s2 = smov 256   ;;  %s1849_s21 = smov 128  }
  0x23   :  { %s1850_s22 = smov 8   ;;  %s1851_s1 = smov [#allocation8]  }
  0x24   :  { %69 = dma.hbm_to_vmem [thread:$0]  %s2257_s9, 256, %s64_s19, [#allocation6], %s1848_s2, %s1849_s21, %s1850_s22  }
  0x25   :  { %s75_s25 = sshll.u32 %s1851_s1, 4  ;;  %s76_s25 = int_to_ptr.vmem [resolvable:$true] %s75_s25 }
  0x26   :  { %s1757_s26 = scalar_lea.vmem %s76_s25, 256  ;;  %p1762_p2 = scmp.lt.s32.totalorder %s76_s25, %s76_s25 }
  0x27   :  { %p1758_p1 = scmp.ne.s32.totalorder %s76_s25, %s1757_s26  ;;  %p1763_p3 = scmp.lt.s32.totalorder %s1757_s26, %s1757_s26 }
  0x29   :  { %p1764_p4 = por %p1763_p3, %p1762_p2 }
  0x2b   :  { %p1765_p5 = pnand %p1764_p4, %p1758_p1 }
  0x2d   :  { %1768 = shalt.err (!%p1765_p5)
}
  0x2e   :  { %81 = dma.hbm_to_vmem [thread:$0]  %s2258_s10, 256, %s76_s25, [#allocation9], %s1848_s2, %s1849_s21, %s1850_s22  }
  0x2f   :  { %1835 = dma.done.wait [#allocation3], 128  }
  0x30   :  { %1836 = vsyncadd [#allocation3], 4294967168 }
  0x31   :  { %1837 = dma.done.wait [#allocation6], 384  }
  0x32   :  { %1838 = vsyncadd [#allocation6], 4294966912 }
  0x33   :  { %1839 = dma.done.wait [#allocation9], 256  }
  0x34   :  { %1840 = vsyncadd [#allocation9], 4294967040  ;;  %v1953_v0 = vld [vmem:[%s2248_s0] sm:$0xff]  ;;  %vm99_vm0 = vcmask 523264   ;;  %v1958_v1 = vld [vmem:[%s2248_s0 + $0x8] sm:$0xff]  ;;  %v1852_v10 = vmov 0  }
  0x35   :  { %v97_v2 = vmul.f32 %v1953_v0, %v1953_v0  ;;  %v98_v3 = vmul.f32 %v1958_v1, %v1958_v1  ;;  %v1589_v6 = vld [vmem:[%s2253_s5 + $0x34] ss:$8 sps:$4 sm:$0xff]   ;;  %v1591_v7 = vld [vmem:[%s2253_s5 + $0x30] ss:$8 sps:$4 sm:$0xff]   ;;  %v1592_v8 = vld [vmem:[%s2253_s5 + $0x24] ss:$8 sps:$4 sm:$0xff]   ;;  %208 = vmatprep.mubr.bf16.mxu1 %v1852_v10 }
  0x36   :  { %184 = vmatprep.subr.bf16.mxu1 %v1589_v6  ;;  %v1594_v9 = vld [vmem:[%s2253_s5 + $0x20] ss:$8 sps:$4 sm:$0xff]   ;;  %v1595_v11 = vld [vmem:[%s2253_s5 + $0x14] ss:$8 sps:$4 sm:$0xff]   ;;  %v1597_v12 = vld [vmem:[%s2253_s5 + $0x10] ss:$8 sps:$4 sm:$0xff]  }
  0x37   :  { %v100_v4 = vsel %vm99_vm0, %v97_v2, 0.0  ;;  %v103_v5 = vsel %vm99_vm0, %v98_v3, 0.0  ;;  %185 = vmatpush1.bf16.msra.mxu1 %v1591_v7  ;;  %v1598_v13 = vld [vmem:[%s2253_s5 + $0x4] ss:$8 sps:$4 sm:$0xff]   ;;  %v1600_v14 = vld [vmem:[%s2253_s5] ss:$8 sps:$4 sm:$0xff]  }
  0x38   :  { %101 = vadd.xlane.f32.xlu0 %v100_v4  ;;  %186 = vmatprep.subr.bf16.mxu1 %v1592_v8  ;;  %v1405_v24 = vld [vmem:[%s2251_s3] ss:$0 sm:$0xff]  ;;  %v1853_v29 = vmov 0.0   ;;  %vm1854_vm1 = vmmov 0   ;;  %v222_v32 = vld [vmem:[#allocation5] sm:$0xff]  ;;  %s1855_s3 = smov 64  }
  0x39   :  { %1512 = vmatprep.subr.bf16.mxu0 %v1853_v29  ;;  %1514 = vmatprep.mubr.msk.bf16.mxu0 %vm1854_vm1, %v1853_v29  ;;  %v219_v31 = vld [vmem:[#allocation2] sm:$0xff]  ;;  %s1856_s5 = smov 112   ;;  %vm235_vm2 = vcmask 261120   ;;  %v254_v44 = vld [vmem:[#allocation7] sm:$0xff]  ;;  %vm267_vm3 = vcmask 130048   ;;  %vm263_vm4 = vcmask 1043456  }
  0x3a   :  { %s1857_s14 = smov 32   ;;  %v506_v60 = vld [vmem:[#allocation7 + $0x8] sm:$0xff]  ;;  %v255_v4 = vld [vmem:[#allocation8] sm:$0xff]  ;;  %s1858_s10 = smov 96  }
  0x3b   :  { %187 = vmatpush1.bf16.msra.mxu1 %v1594_v9  ;;  %s1370_s9 = scalar_lea.hbm %s2260_s12, 128 }
  0x3c   :  { %104 = vadd.xlane.f32.xlu0 %v103_v5  ;;  %188 = vmatprep.subr.bf16.mxu1 %v1595_v11 }
  0x3f   :  { %189 = vmatpush1.bf16.msra.mxu1 %v1597_v12 }
  0x40   :  { %190 = vmatprep.subr.bf16.mxu1 %v1598_v13 }
  0x43   :  { %191 = vmatpush1.bf16.msra.mxu1 %v1600_v14 }
  0x44   :  { %1488 = vmatprep.subr.bf16.mxu1 %v1853_v29 }
  0xc1   :  { %v102_v15 = vpop.xlane.xlu0 %101 }
  0xc2   :  { %v107_v16 = vmul.f32 0.015625, %v102_v15 }
  0xc4   :  { %v110_v17 = vadd.f32 1e-06, %v107_v16 }
  0xc5   :  { %v105_v18 = vpop.xlane.xlu0 %104 }
  0xc6   :  { %1633 = vrsqrt.f32 %v110_v17  ;;  %v108_v19 = vmul.f32 0.015625, %v105_v18 }
  0xc8   :  { %v111_v20 = vadd.f32 1e-06, %v108_v19 }
  0xca   :  { %1635 = vrsqrt.f32 %v111_v20 }
  0xd3   :  { %v1634_v21 = vpop.eup %1633 }
  0xd4   :  { %v114_v22 = vmul.f32 %v1634_v21, %v1953_v0 }
  0xd6   :  { %v122_v26 = vmul.f32 %v1405_v24, %v114_v22 }
  0xd7   :  { %v1636_v23 = vpop.eup %1635 }
  0xd8   :  { %v115_v25 = vmul.f32 %v1636_v23, %v1958_v1 }
  0xda   :  { %v123_v27 = vmul.f32 %v1405_v24, %v115_v25 }
  0xdc   :  { %v124_v28 = vpack.c.bf16 %v123_v27, %v122_v26 }
  0xde   :  { %1414 = vmatmul.mubr.msk.bf16.vlgmr.msra.gmra.mxu1 %vm99_vm0, %v124_v28 }
  0xdf   :  { %1490 = vmatprep.mubr.msk.bf16.mxu1 %vm1854_vm1, %v1853_v29 }
 0x19e   :  { %v210_v30 = vpop.f32.mrf.mxu1 }
 0x19f   :  { %v220_v34 = vmul.f32 %v219_v31, %v210_v30 }
 0x1a0   :  { %v212_v33 = vpop.f32.mrf.mxu1 }
 0x1a1   :  { %v223_v35 = vmul.f32 %v222_v32, %v212_v33 }
 0x1a2   :  { %v214_v36 = vpop.f32.mrf.mxu1 }
 0x1a3   :  { %v225_v37 = vadd.f32 %v223_v35, %v220_v34  ;;  %v221_v39 = vmul.f32 %v219_v31, %v214_v36 }
 0x1a4   :  { %v216_v38 = vpop.f32.mrf.mxu1 }
 0x1a5   :  { %v224_v40 = vmul.f32 %v222_v32, %v216_v38  ;;  %229 = vrot.lane.b32.xlu1 %v225_v37, %s1855_s3  ;;  %v258_v41 = vpack.c.bf16 %v225_v37, %v225_v37 }
 0x1a7   :  { %v2004_v42 = vadd.f32 %v224_v40, %v221_v39  ;;  %v260_v43 = vrot.slane %v258_v41, 4 }
 0x1a9   :  { %261 = vrot.lane.b32.xlu1 %v260_v43, %s1856_s5  ;;  %v511_v56 = vpack.c.bf16 %v2004_v42, %v2004_v42 }
 0x1ab   :  { %v513_v57 = vrot.slane %v511_v56, 4 }
 0x217   :  { %v230_v45 = vpop.permute.xlu1 %229 }
 0x218   :  { %236 = vst.msk [vmem:[#allocation11] sm:$0xff] %vm235_vm2, %v230_v45  ;;  %v256_v46 = vpack.c.bf16 %v230_v45, %v254_v44 }
 0x21a   :  { %v271_v47 = vsel %vm267_vm3, %v256_v46, 0 }
 0x21b   :  { %1489 = vmatpush3.bf16.xpose.msra.mxu1 %v271_v47  ;;  %v262_v48 = vpop.permute.xlu1 %261 }
 0x21c   :  { %1494 = vmatprep.subr.bf16.mxu1 %v1853_v29  ;;  %v266_v49 = vsel %vm263_vm4, %v258_v41, %v262_v48 }
 0x222   :  { %1491 = vmatmul.mubr.msk.bf16.vlgmr.msra.gmra.mxu1 %vm267_vm3, %v266_v49 }
 0x223   :  { %1496 = vmatprep.mubr.msk.bf16.mxu1 %vm1854_vm1, %v1853_v29 }
 0x2e2   :  { %v307_v50 = vpop.f32.mrf.mxu1 }
 0x2e3   :  { %v314_v51 = vsel %vm267_vm3, %v307_v50, -inf }
 0x2e4   :  { %315 = vmax.xlane.f32.xlu0 %v314_v51  ;;  %v1492_v52 = vpop.f32.mrf.mxu1 }
 0x2e6   :  { %v310_v53 = vpop.f32.mrf.mxu1 }
 0x2e7   :  { %v317_v54 = vsel %vm267_vm3, %v310_v53, -inf }
 0x2e8   :  { %318 = vmax.xlane.f32.xlu1 %v317_v54  ;;  %v1493_v55 = vpop.f32.mrf.mxu1 }
 0x2f9   :  { %238 = vrot.lane.b32.xlu1 %v225_v37, %s1857_s14 }
 0x2fa   :  { %231 = vrot.lane.b32.xlu0 %v2004_v42, %s1855_s3 }
 0x2fe   :  { %514 = vrot.lane.b32.xlu0 %v513_v57, %s1856_s5 }
 0x36d   :  { %v316_v58 = vpop.xlane.xlu0 %315 }
 0x36e   :  { %v320_v59 = vsub.f32 %v307_v50, %v316_v58 }
 0x370   :  { %v322_v61 = vmul.f32 1.442695, %v320_v59 }
 0x371   :  { %v319_v62 = vpop.xlane.xlu1 %318  ;;  %v232_v63 = vpop.permute.xlu0 %231 }
 0x372   :  { %1637 = vpow2.f32 %v322_v61  ;;  %v321_v2 = vsub.f32 %v310_v53, %v319_v62  ;;  %237 = vst.msk [vmem:[#allocation11 + $0x8] sm:$0xff] %vm235_vm2, %v232_v63  ;;  %v509_v3 = vpack.c.bf16 %v232_v63, %v506_v60 }
 0x374   :  { %v324_v5 = vmul.f32 1.442695, %v321_v2  ;;  %v522_v6 = vsel %vm267_vm3, %v509_v3, 0 }
 0x375   :  { %v239_v7 = vpop.permute.xlu1 %238  ;;  %1513 = vmatpush3.bf16.xpose.msra.mxu0 %v522_v6  ;;  %v515_v9 = vpop.permute.xlu0 %514 }
 0x376   :  { %1639 = vpow2.f32 %v324_v5  ;;  %244 = vst.msk [vmem:[#allocation13] sm:$0xff] %vm235_vm2, %v239_v7  ;;  %v2025_v8 = vpack.c.bf16 %v239_v7, %v255_v4  ;;  %1524 = vmatprep.subr.bf16.mxu0 %v1853_v29  ;;  %v518_v11 = vsel %vm263_vm4, %v511_v56, %v515_v9 }
 0x378   :  { %1495 = vmatpush3.bf16.msra.mxu1 %v2025_v8 }
 0x379   :  { %1500 = vmatprep.subr.bf16.mxu1 %v1853_v29 }
 0x37c   :  { %1515 = vmatmul.mubr.msk.bf16.vlgmr.msra.gmra.mxu0 %vm267_vm3, %v518_v11 }
 0x37d   :  { %1526 = vmatprep.mubr.msk.bf16.mxu0 %vm1854_vm1, %v1853_v29 }
 0x37f   :  { %v1638_v12 = vpop.eup %1637 }
 0x380   :  { %v326_v13 = vsel %vm267_vm3, %v1638_v12, 0.0 }
 0x381   :  { %327 = vadd.xlane.f32.xlu0 %v326_v13 }
 0x383   :  { %v1640_v14 = vpop.eup %1639 }
 0x384   :  { %v329_v15 = vsel %vm267_vm3, %v1640_v14, 0.0 }
 0x385   :  { %330 = vadd.xlane.f32.xlu1 %v329_v15 }
 0x396   :  { %385 = vrot.lane.b32.xlu1 %v256_v46, %s1856_s5 }
 0x397   :  { %382 = vrot.lane.b32.xlu0 %v266_v49, %s1858_s10 }
 0x39a   :  { %636 = vrot.lane.b32.xlu1 %v509_v3, %s1856_s5 }
 0x39e   :  { %633 = vrot.lane.b32.xlu1 %v518_v11, %s1858_s10 }
 0x40a   :  { %v328_v16 = vpop.xlane.xlu0 %327 }
 0x40b   :  { %1641 = vrcp.f32 %v328_v16 }
 0x40e   :  { %v331_v17 = vpop.xlane.xlu1 %330  ;;  %v383_v28 = vpop.permute.xlu0 %382 }
 0x40f   :  { %1643 = vrcp.f32 %v331_v17 }
 0x412   :  { %v386_v18 = vpop.permute.xlu1 %385 }
 0x413   :  { %v391_v27 = vsel %vm267_vm3, %v386_v18, 0 }
 0x416   :  { %v637_v19 = vpop.permute.xlu1 %636 }
 0x417   :  { %v642_v20 = vsel %vm267_vm3, %v637_v19, 0 }
 0x418   :  { %1525 = vmatpush3.bf16.xpose.msra.mxu0 %v642_v20  ;;  %v1642_v21 = vpop.eup %1641 }
 0x419   :  { %1536 = vmatprep.subr.bf16.mxu0 %v1853_v29  ;;  %v333_v23 = vmul.f32 %v1642_v21, %v1638_v12 }
 0x41a   :  { %v634_v25 = vpop.permute.xlu1 %633 }
 0x41c   :  { %v1644_v22 = vpop.eup %1643 }
 0x41d   :  { %v335_v24 = vmul.f32 %v1644_v22, %v1640_v14 }
 0x41f   :  { %1527 = vmatmul.mubr.msk.bf16.vlgmr.msra.gmra.mxu0 %vm267_vm3, %v634_v25  ;;  %v336_v26 = vpack.c.bf16 %v335_v24, %v333_v23  ;;  %v508_v23 = vld [vmem:[#allocation8 + $0x8] sm:$0xff] }
 0x420   :  { %1538 = vmatprep.mubr.msk.bf16.mxu0 %vm1854_vm1, %v1853_v29 }
 0x421   :  { %1497 = vmatmul.mubr.msk.bf16.vlgmr.msra.gmra.mxu1 %vm267_vm3, %v336_v26 }
 0x422   :  { %1501 = vmatpush3.bf16.xpose.msra.mxu1 %v391_v27  ;;  %1502 = vmatprep.mubr.msk.bf16.mxu1 %vm1854_vm1, %v1853_v29 }
 0x423   :  { %1506 = vmatprep.subr.bf16.mxu1 %v1853_v29 }
 0x429   :  { %1503 = vmatmul.mubr.msk.bf16.vlgmr.msra.gmra.mxu1 %vm267_vm3, %v383_v28 }
 0x42a   :  { %1508 = vmatprep.mubr.msk.bf16.mxu1 %vm1854_vm1, %v1853_v29 }
 0x43c   :  { %v558_v30 = vpop.f32.mrf.mxu0 }
 0x43d   :  { %v565_v47 = vsel %vm267_vm3, %v558_v30, -inf }
 0x43e   :  { %v1516_v31 = vpop.f32.mrf.mxu0 }
 0x440   :  { %v561_v32 = vpop.f32.mrf.mxu0 }
 0x441   :  { %v568_v50 = vsel %vm267_vm3, %v561_v32, -inf }
 0x442   :  { %v1517_v33 = vpop.f32.mrf.mxu0 }
 0x4df   :  { %v678_v34 = vpop.f32.mrf.mxu0 }
 0x4e0   :  { %v685_v52 = vsel %vm267_vm3, %v678_v34, -inf }
 0x4e1   :  { %v2051_v35 = vpop.f32.mrf.mxu1  ;;  %v1528_v36 = vpop.f32.mrf.mxu0 }
 0x4e3   :  { %v1498_v37 = vpop.f32.mrf.mxu1  ;;  %v681_v38 = vpop.f32.mrf.mxu0 }
 0x4e4   :  { %v688_v51 = vsel %vm267_vm3, %v681_v38, -inf }
 0x4e5   :  { %v2053_v39 = vpop.f32.mrf.mxu1  ;;  %v1529_v40 = vpop.f32.mrf.mxu0 }
 0x4e7   :  { %v1499_v41 = vpop.f32.mrf.mxu1 }
 0x4e9   :  { %v427_v43 = vpop.f32.mrf.mxu1 }
 0x4ea   :  { %v434_v44 = vsel %vm267_vm3, %v427_v43, -inf }
 0x4eb   :  { %435 = vmax.xlane.f32.xlu1 %v434_v44  ;;  %v1504_v45 = vpop.f32.mrf.mxu1 }
 0x4ed   :  { %v430_v46 = vpop.f32.mrf.mxu1 }
 0x4ee   :  { %v437_v48 = vsel %vm267_vm3, %v430_v46, -inf }
 0x4ef   :  { %566 = vmax.xlane.f32.xlu1 %v565_v47  ;;  %438 = vmax.xlane.f32.xlu0 %v437_v48  ;;  %v1505_v49 = vpop.f32.mrf.mxu1 }
 0x4f3   :  { %569 = vmax.xlane.f32.xlu1 %v568_v50  ;;  %689 = vmax.xlane.f32.xlu0 %v688_v51  ;;  %v1601_v51 = vld [vmem:[%s2254_s6] sm:$0xff]  }
 0x4f4   :  { %1537 = vmatpush3.bf16.msra.mxu0 %v1601_v51 }
 0x4f5   :  { %1548 = vmatprep.subr.bf16.mxu0 %v1853_v29 }
 0x4f7   :  { %686 = vmax.xlane.f32.xlu1 %v685_v52  ;;  %v1602_v52 = vld [vmem:[%s2254_s6 + $0x8] sm:$0xff]  }
 0x508   :  { %240 = vrot.lane.b32.xlu1 %v2004_v42, %s1857_s14 }
 0x574   :  { %v436_v53 = vpop.xlane.xlu1 %435 }
 0x575   :  { %v440_v62 = vsub.f32 %v427_v43, %v436_v53 }
 0x577   :  { %v442_v5 = vmul.f32 1.442695, %v440_v62  ;;  %v1604_v62 = vld [vmem:[%s2254_s6 + $0x18] sm:$0xff]  }
 0x578   :  { %v567_v54 = vpop.xlane.xlu1 %566  ;;  %v439_v55 = vpop.xlane.xlu0 %438 }
 0x579   :  { %v571_v56 = vsub.f32 %v558_v30, %v567_v54  ;;  %v441_v6 = vsub.f32 %v430_v46, %v439_v55 }
 0x57b   :  { %v573_v57 = vmul.f32 1.442695, %v571_v56  ;;  %v444_v9 = vmul.f32 1.442695, %v441_v6 }
 0x57c   :  { %v570_v58 = vpop.xlane.xlu1 %569  ;;  %v690_v59 = vpop.xlane.xlu0 %689 }
 0x57d   :  { %1645 = vpow2.f32 %v573_v57  ;;  %v572_v60 = vsub.f32 %v561_v32, %v570_v58  ;;  %v692_v61 = vsub.f32 %v681_v38, %v690_v59  ;;  %v1603_v58 = vld [vmem:[%s2254_s6 + $0x10] sm:$0xff]  }
 0x57f   :  { %v575_v63 = vmul.f32 1.442695, %v572_v60  ;;  %v695_v2 = vmul.f32 1.442695, %v692_v61 }
 0x580   :  { %v687_v3 = vpop.xlane.xlu1 %686 }
 0x581   :  { %1647 = vpow2.f32 %v575_v63  ;;  %v691_v4 = vsub.f32 %v678_v34, %v687_v3 }
 0x582   :  { %1649 = vpow2.f32 %v695_v2 }
 0x583   :  { %v693_v42 = vmul.f32 1.442695, %v691_v4 }
 0x584   :  { %v241_v7 = vpop.permute.xlu1 %240 }
 0x585   :  { %1651 = vpow2.f32 %v693_v42  ;;  %245 = vst.msk [vmem:[#allocation13 + $0x8] sm:$0xff] %vm235_vm2, %v241_v7  ;;  %v510_v24 = vpack.c.bf16 %v241_v7, %v508_v23 }
 0x586   :  { %1653 = vpow2.f32 %v442_v5 }
 0x587   :  { %1655 = vpow2.f32 %v444_v9 }
 0x58a   :  { %v1646_v11 = vpop.eup %1645 }
 0x58b   :  { %v577_v12 = vsel %vm267_vm3, %v1646_v11, 0.0 }
 0x58c   :  { %578 = vadd.xlane.f32.xlu0 %v577_v12 }
 0x58e   :  { %v1648_v13 = vpop.eup %1647 }
 0x58f   :  { %v1650_v14 = vpop.eup %1649  ;;  %v580_v15 = vsel %vm267_vm3, %v1648_v13, 0.0 }
 0x590   :  { %581 = vadd.xlane.f32.xlu0 %v580_v15  ;;  %v700_v16 = vsel %vm267_vm3, %v1650_v14, 0.0 }
 0x591   :  { %701 = vadd.xlane.f32.xlu1 %v700_v16 }
 0x592   :  { %v1652_v17 = vpop.eup %1651 }
 0x593   :  { %v697_v18 = vsel %vm267_vm3, %v1652_v17, 0.0  ;;  %v1654_v19 = vpop.eup %1653 }
 0x594   :  { %698 = vadd.xlane.f32.xlu0 %v697_v18  ;;  %v446_v20 = vsel %vm267_vm3, %v1654_v19, 0.0  ;;  %v1656_v21 = vpop.eup %1655 }
 0x595   :  { %v449_v22 = vsel %vm267_vm3, %v1656_v21, 0.0 }
 0x598   :  { %447 = vadd.xlane.f32.xlu0 %v446_v20 }
 0x59c   :  { %450 = vadd.xlane.f32.xlu0 %v449_v22 }
 0x5b2   :  { %458 = vrot.lane.b32.xlu0 %v2025_v8, %s1856_s5 }
 0x5b6   :  { %709 = vrot.lane.b32.xlu0 %v510_v24, %s1856_s5 }
 0x615   :  { %v579_v25 = vpop.xlane.xlu0 %578 }
 0x619   :  { %v582_v26 = vpop.xlane.xlu0 %581 }
 0x61a   :  { %v702_v33 = vpop.xlane.xlu1 %701 }
 0x61d   :  { %v699_v27 = vpop.xlane.xlu0 %698 }
 0x621   :  { %v448_v28 = vpop.xlane.xlu0 %447 }
 0x622   :  { %1657 = vrcp.f32 %v448_v28 }
 0x625   :  { %v451_v30 = vpop.xlane.xlu0 %450 }
 0x626   :  { %1659 = vrcp.f32 %v451_v30 }
 0x627   :  { %1661 = vrcp.f32 %v582_v26 }
 0x628   :  { %1663 = vrcp.f32 %v579_v25 }
 0x629   :  { %v459_v31 = vpop.permute.xlu0 %458  ;;  %1665 = vrcp.f32 %v699_v27 }
 0x62a   :  { %1507 = vmatpush3.bf16.msra.mxu1 %v459_v31  ;;  %1667 = vrcp.f32 %v702_v33 }
 0x62b   :  { %1518 = vmatprep.subr.bf16.mxu1 %v1853_v29 }
 0x62d   :  { %v710_v46 = vpop.permute.xlu0 %709 }
 0x62f   :  { %v1658_v32 = vpop.eup %1657 }
 0x630   :  { %v453_v34 = vmul.f32 %v1658_v32, %v1654_v19 }
 0x633   :  { %v1660_v8 = vpop.eup %1659 }
 0x634   :  { %v455_v36 = vmul.f32 %v1660_v8, %v1656_v21  ;;  %v1662_v38 = vpop.eup %1661 }
 0x635   :  { %v1664_v40 = vpop.eup %1663  ;;  %v586_v41 = vmul.f32 %v1662_v38, %v1648_v13  ;;  %v1611_v38 = vld [vmem:[%s2255_s7 + $0x34] ss:$12 sps:$4 sm:$0xff]  }
 0x636   :  { %v456_v37 = vpack.c.bf16 %v455_v36, %v453_v34  ;;  %v584_v43 = vmul.f32 %v1664_v40, %v1646_v11  ;;  %v1666_v45 = vpop.eup %1665  ;;  %v1607_v34 = vld [vmem:[%s2255_s7 + $0x4c] ss:$12 sps:$4 sm:$0xff]   ;;  %v1605_v36 = vld [vmem:[%s2255_s7 + $0x48] ss:$12 sps:$4 sm:$0xff]   ;;  %v1609_v40 = vld [vmem:[%s2255_s7 + $0x30] ss:$12 sps:$4 sm:$0xff]  }
 0x637   :  { %v1668_v47 = vpop.eup %1667  ;;  %v704_v48 = vmul.f32 %v1666_v45, %v1652_v17  ;;  %v1616_v45 = vld [vmem:[%s2255_s7 + $0x20] ss:$12 sps:$4 sm:$0xff]  }
 0x638   :  { %1509 = vmatmul.mubr.msk.bf16.vlgmr.msra.gmra.mxu1 %vm267_vm3, %v456_v37  ;;  %v587_v44 = vpack.c.bf16 %v586_v41, %v584_v43  ;;  %v706_v49 = vmul.f32 %v1668_v47, %v1650_v14  ;;  %v1608_v37 = vld [vmem:[%s2255_s7 + $0x50] ss:$12 sps:$4 sm:$0xff]   ;;  %v1612_v41 = vld [vmem:[%s2255_s7 + $0x38] ss:$12 sps:$4 sm:$0xff]  }
 0x639   :  { %1519 = vmatpush3.bf16.msra.mxu1 %v510_v24  ;;  %1520 = vmatprep.mubr.msk.bf16.mxu1 %vm1854_vm1, %v1853_v29  ;;  %v1615_v43 = vld [vmem:[%s2255_s7 + $0x1c] ss:$12 sps:$4 sm:$0xff]   ;;  %v1619_v47 = vld [vmem:[%s2255_s7 + $0x4] ss:$12 sps:$4 sm:$0xff]  }
 0x63a   :  { %1530 = vmatprep.subr.bf16.mxu1 %v1853_v29  ;;  %v707_v50 = vpack.c.bf16 %v706_v49, %v704_v48  ;;  %v1620_v48 = vld [vmem:[%s2255_s7 + $0x8] ss:$12 sps:$4 sm:$0xff]  }
 0x640   :  { %1521 = vmatmul.mubr.msk.bf16.vlgmr.msra.gmra.mxu1 %vm267_vm3, %v587_v44  ;;  %v1613_v44 = vld [vmem:[%s2255_s7 + $0x18] ss:$12 sps:$4 sm:$0xff]  }
 0x641   :  { %1531 = vmatpush3.bf16.msra.mxu1 %v710_v46  ;;  %1532 = vmatprep.mubr.msk.bf16.mxu1 %vm1854_vm1, %v1853_v29  ;;  %v1617_v46 = vld [vmem:[%s2255_s7] ss:$12 sps:$4 sm:$0xff]  }
 0x642   :  { %1542 = vmatprep.subr.bf16.mxu1 %v1853_v29 }
 0x648   :  { %1533 = vmatmul.mubr.msk.bf16.vlgmr.msra.gmra.mxu1 %vm267_vm3, %v707_v50 }
 0x649   :  { %1544 = vmatprep.mubr.msk.bf16.mxu1 %vm1854_vm1, %v1853_v29  ;;  %1543 = vmatpush3.bf16.msra.mxu1 %v1602_v52 }
 0x64a   :  { %1554 = vmatprep.subr.bf16.mxu1 %v1853_v29 }
 0x6f8   :  { %v498_v53 = vpop.f32.mrf.mxu1 }
 0x6fa   :  { %v1510_v54 = vpop.f32.mrf.mxu1 }
 0x6fc   :  { %v501_v55 = vpop.f32.mrf.mxu1 }
 0x6fe   :  { %v1511_v56 = vpop.f32.mrf.mxu1 }
 0x700   :  { %v625_v57 = vpop.f32.mrf.mxu1 }
 0x701   :  { %v756_v59 = vpack.c.bf16 %v625_v57, %v2051_v35 }
 0x702   :  { %v1522_v60 = vpop.f32.mrf.mxu1 }
 0x703   :  { %1539 = vmatmul.mubr.msk.bf16.vlgmr.msra.gmra.mxu0 %vm267_vm3, %v756_v59 }
 0x704   :  { %v628_v61 = vpop.f32.mrf.mxu1  ;;  %1549 = vmatpush3.bf16.msra.mxu0 %v1603_v58  ;;  %1550 = vmatprep.mubr.msk.bf16.mxu0 %vm1854_vm1, %v1853_v29 }
 0x705   :  { %v809_v63 = vpack.c.bf16 %v628_v61, %v2053_v39  ;;  %1085 = vmatprep.subr.bf16.mxu0 %v1607_v34 }
 0x706   :  { %v1523_v2 = vpop.f32.mrf.mxu1 }
 0x707   :  { %1545 = vmatmul.mubr.msk.bf16.vlgmr.msra.gmra.mxu1 %vm267_vm3, %v809_v63  ;;  %v1622_v63 = vld [vmem:[%s2256_s8 + $0x30] sm:$0xff]   ;;  %v1623_v2 = vld [vmem:[%s2256_s8 + $0x28] sm:$0xff]  }
 0x708   :  { %v749_v3 = vpop.f32.mrf.mxu1  ;;  %1555 = vmatpush3.bf16.msra.mxu1 %v1604_v62  ;;  %1556 = vmatprep.mubr.msk.bf16.mxu1 %vm1854_vm1, %v1853_v29  ;;  %v1621_v62 = vld [vmem:[%s2256_s8 + $0x38] sm:$0xff]  }
 0x709   :  { %v862_v35 = vpack.c.bf16 %v749_v3, %v498_v53  ;;  %1560 = vmatprep.subr.bf16.mxu1 %v1853_v29  ;;  %v1624_v3 = vld [vmem:[%s2256_s8 + $0x20] sm:$0xff]  }
 0x70a   :  { %v1534_v4 = vpop.f32.mrf.mxu1 }
 0x70b   :  { %1551 = vmatmul.mubr.msk.bf16.vlgmr.msra.gmra.mxu0 %vm267_vm3, %v862_v35  ;;  %v1625_v35 = vld [vmem:[%s2256_s8 + $0x18] sm:$0xff]   ;;  %v1626_v4 = vld [vmem:[%s2256_s8 + $0x10] sm:$0xff]  }
 0x70c   :  { %v752_v5 = vpop.f32.mrf.mxu1  ;;  %1109 = vmatprep.mubr.bf16.mxu0 %v1852_v10  ;;  %1086 = vmatpush1.bf16.msra.mxu0 %v1605_v36 }
 0x70d   :  { %v915_v6 = vpack.c.bf16 %v752_v5, %v501_v55  ;;  %1087 = vmatprep.subr.bf16.mxu0 %v1611_v38  ;;  %v1627_v5 = vld [vmem:[%s2256_s8 + $0x8] sm:$0xff]  }
 0x70e   :  { %v1535_v42 = vpop.f32.mrf.mxu1 }
 0x70f   :  { %1557 = vmatmul.mubr.msk.bf16.vlgmr.msra.gmra.mxu1 %vm267_vm3, %v915_v6  ;;  %v1628_v6 = vld [vmem:[%s2256_s8] sm:$0xff]   ;;  %v1629_v42 = vld [vmem:[%s2256_s8 + $0x58] sm:$0xff]  }
 0x710   :  { %1568 = vmatprep.mubr.msk.bf16.mxu1 %vm1854_vm1, %v1853_v29  ;;  %1561 = vmatpush3.bf16.msra.mxu1 %v1608_v37 }
 0x711   :  { %1562 = vmatprep.subr.bf16.mxu1 %v1853_v29  ;;  %1088 = vmatpush1.bf16.msra.mxu0 %v1609_v40 }
 0x712   :  { %1089 = vmatprep.subr.bf16.mxu0 %v1615_v43 }
 0x714   :  { %1563 = vmatpush3.bf16.msra.mxu1 %v1612_v41 }
 0x715   :  { %1564 = vmatprep.subr.bf16.mxu1 %v1853_v29  ;;  %1090 = vmatpush1.bf16.msra.mxu0 %v1613_v44 }
 0x716   :  { %1091 = vmatprep.subr.bf16.mxu0 %v1619_v47 }
 0x718   :  { %1565 = vmatpush3.bf16.msra.mxu1 %v1616_v45 }
 0x719   :  { %1566 = vmatprep.subr.bf16.mxu1 %v1853_v29  ;;  %1092 = vmatpush1.bf16.msra.mxu0 %v1617_v46  ;;  %v1431_v29 = vld [vmem:[%s2252_s4] ss:$0 sm:$0xff] }
 0x71a   :  { %1308 = vmatprep.subr.bf16.mxu0 %v1852_v10 }
 0x71c   :  { %1567 = vmatpush3.bf16.msra.mxu1 %v1620_v48 }
 0x7c3   :  { %v800_v39 = vpop.f32.mrf.mxu0 }
 0x7c4   :  { %v807_v14 = vadd.f32 %v800_v39, %v1953_v0  ;;  %v1630_v39 = vld [vmem:[%s2256_s8 + $0x50] sm:$0xff]  }
 0x7c5   :  { %v1540_v7 = vpop.f32.mrf.mxu0 }
 0x7c6   :  { %v1631_v7 = vld [vmem:[%s2256_s8 + $0x48] sm:$0xff]  }
 0x7c7   :  { %v803_v9 = vpop.f32.mrf.mxu0  ;;  %v853_v11 = vpop.f32.mrf.mxu1 }
 0x7c8   :  { %v860_v17 = vadd.f32 %v853_v11, %v807_v14  ;;  %v808_v20 = vadd.f32 %v803_v9, %v1958_v1  ;;  %v1632_v9 = vld [vmem:[%s2256_s8 + $0x40] sm:$0xff]   ;;  %s1859_s8 = smov [#allocation11]  }
 0x7c9   :  { %v1541_v12 = vpop.f32.mrf.mxu0  ;;  %v1546_v13 = vpop.f32.mrf.mxu1 }
 0x7cb   :  { %v856_v15 = vpop.f32.mrf.mxu1  ;;  %v906_v16 = vpop.f32.mrf.mxu0 }
 0x7cc   :  { %v913_v21 = vadd.f32 %v906_v16, %v860_v17  ;;  %v861_v24 = vadd.f32 %v856_v15, %v808_v20 }
 0x7cd   :  { %v1547_v18 = vpop.f32.mrf.mxu1  ;;  %v1552_v19 = vpop.f32.mrf.mxu0 }
 0x7cf   :  { %v909_v22 = vpop.f32.mrf.mxu0  ;;  %v959_v23 = vpop.f32.mrf.mxu1 }
 0x7d0   :  { %v2115_v25 = vadd.f32 %v959_v23, %v913_v21  ;;  %v914_v28 = vadd.f32 %v909_v22, %v861_v24 }
 0x7d1   :  { %v1553_v26 = vpop.f32.mrf.mxu0  ;;  %v1558_v27 = vpop.f32.mrf.mxu1 }
 0x7d2   :  { %v968_v30 = vmul.f32 %v2115_v25, %v2115_v25 }
 0x7d3   :  { %v962_v0 = vpop.f32.mrf.mxu1 }
 0x7d4   :  { %v2119_v31 = vadd.f32 %v962_v0, %v914_v28  ;;  %v970_v32 = vsel %vm99_vm0, %v968_v30, 0.0 }
 0x7d5   :  { %971 = vadd.xlane.f32.xlu0 %v970_v32  ;;  %v1559_v33 = vpop.f32.mrf.mxu1 }
 0x7d6   :  { %v969_v1 = vmul.f32 %v2119_v31, %v2119_v31 }
 0x7d8   :  { %v973_v8 = vsel %vm99_vm0, %v969_v1, 0.0 }
 0x7d9   :  { %974 = vadd.xlane.f32.xlu1 %v973_v8 }
 0x85e   :  { %v972_v49 = vpop.xlane.xlu0 %971 }
 0x85f   :  { %v976_v50 = vmul.f32 0.015625, %v972_v49 }
 0x861   :  { %v979_v51 = vadd.f32 1e-06, %v976_v50 }
 0x862   :  { %v975_v52 = vpop.xlane.xlu1 %974 }
 0x863   :  { %1669 = vrsqrt.f32 %v979_v51  ;;  %v977_v53 = vmul.f32 0.015625, %v975_v52 }
 0x865   :  { %v980_v54 = vadd.f32 1e-06, %v977_v53 }
 0x867   :  { %1671 = vrsqrt.f32 %v980_v54 }
 0x870   :  { %v1670_v55 = vpop.eup %1669 }
 0x871   :  { %v983_v56 = vmul.f32 %v1670_v55, %v2115_v25 }
 0x873   :  { %v991_v59 = vmul.f32 %v1431_v29, %v983_v56 }
 0x874   :  { %v1672_v57 = vpop.eup %1671 }
 0x875   :  { %v984_v58 = vmul.f32 %v1672_v57, %v2119_v31 }
 0x877   :  { %v992_v60 = vmul.f32 %v1431_v29, %v984_v58 }
 0x879   :  { %v993_v61 = vpack.c.bf16 %v992_v60, %v991_v59 }
 0x87b   :  { %1444 = vmatmul.mubr.msk.bf16.vlgmr.msra.gmra.mxu0 %vm99_vm0, %v993_v61  ;;  %1569 = vmatmul.mubr.msk.bf16.vlgmr.msra.gmra.mxu1 %vm99_vm0, %v993_v61 }
 0x87c   :  { %1309 = vmatpush1.bf16.msra.mxu0 %v1621_v62 }
 0x87d   :  { %1310 = vmatprep.subr.bf16.mxu0 %v1852_v10 }
 0x880   :  { %1311 = vmatpush1.bf16.msra.mxu0 %v1622_v63 }
 0x881   :  { %1312 = vmatprep.subr.bf16.mxu0 %v1852_v10 }
 0x884   :  { %1313 = vmatpush1.bf16.msra.mxu0 %v1623_v2 }
 0x885   :  { %1314 = vmatprep.subr.bf16.mxu0 %v1852_v10 }
 0x888   :  { %1315 = vmatpush1.bf16.msra.mxu0 %v1624_v3 }
 0x889   :  { %1316 = vmatprep.subr.bf16.mxu0 %v1852_v10 }
 0x88c   :  { %1317 = vmatpush1.bf16.msra.mxu0 %v1625_v35 }
 0x88d   :  { %1318 = vmatprep.subr.bf16.mxu0 %v1852_v10 }
 0x890   :  { %1319 = vmatpush1.bf16.msra.mxu0 %v1626_v4 }
 0x891   :  { %1320 = vmatprep.subr.bf16.mxu0 %v1852_v10 }
 0x894   :  { %1321 = vmatpush1.bf16.msra.mxu0 %v1627_v5 }
 0x895   :  { %1322 = vmatprep.subr.bf16.mxu0 %v1852_v10 }
 0x898   :  { %1323 = vmatpush1.bf16.msra.mxu0 %v1628_v6 }
 0x899   :  { %1332 = vmatprep.subr.bf16.mxu0 %v1852_v10 }
 0x89c   :  { %1333 = vmatpush2.bf16.msra.mxu0 %v1629_v42 }
 0x89d   :  { %1334 = vmatprep.subr.bf16.mxu0 %v1852_v10 }
 0x8a0   :  { %1335 = vmatpush2.bf16.msra.mxu0 %v1630_v39 }
 0x8a1   :  { %1336 = vmatprep.subr.bf16.mxu0 %v1852_v10 }
 0x8a4   :  { %1337 = vmatpush2.bf16.msra.mxu0 %v1631_v7 }
 0x8a5   :  { %1338 = vmatprep.subr.bf16.mxu0 %v1852_v10 }
 0x8a8   :  { %1339 = vmatpush2.bf16.msra.mxu0 %v1632_v9 }
 0x93b   :  { %v1111_v11 = vpop.f32.mrf.mxu0  ;;  %v1154_v12 = vpop.f32.mrf.mxu1 }
 0x93c   :  { %1191 = vrot.lane.b32.xlu1 %v1154_v12, %s1855_s3  ;;  %v1161_v10 = vsub.f32 0.0, %v1111_v11 }
 0x93d   :  { %v1113_v13 = vpop.f32.mrf.mxu0  ;;  %v1570_v14 = vpop.f32.mrf.mxu1 }
 0x93e   :  { %v1162_v19 = vsub.f32 0.0, %v1113_v13  ;;  %v1165_v22 = vmul.f32 1.442695, %v1161_v10 }
 0x93f   :  { %v1115_v15 = vpop.f32.mrf.mxu0  ;;  %v1157_v16 = vpop.f32.mrf.mxu1 }
 0x940   :  { %1189 = vrot.lane.b32.xlu1 %v1113_v13, %s1855_s3  ;;  %v1163_v21 = vsub.f32 0.0, %v1115_v15  ;;  %v1167_v23 = vmul.f32 1.442695, %v1162_v19  ;;  %1673 = vpow2.f32 %v1165_v22 }
 0x941   :  { %v1117_v17 = vpop.f32.mrf.mxu0  ;;  %v1571_v18 = vpop.f32.mrf.mxu1 }
 0x942   :  { %1193 = vrot.lane.b32.xlu0 %v1117_v17, %s1855_s3  ;;  %v1164_v20 = vsub.f32 0.0, %v1117_v17  ;;  %v1169_v26 = vmul.f32 1.442695, %v1163_v21  ;;  %1675 = vpow2.f32 %v1167_v23 }
 0x944   :  { %1195 = vrot.lane.b32.xlu1 %v1157_v16, %s1855_s3  ;;  %v1171_v24 = vmul.f32 1.442695, %v1164_v20  ;;  %s1371_s3 = sshll.u32 %s1859_s8, 4  ;;  %s1372_s3 = int_to_ptr.vmem [resolvable:$true] %s1371_s3 }
 0x945   :  { %s1769_s4 = scalar_lea.vmem %s1372_s3, 256  ;;  %p1774_p7 = scmp.lt.s32.totalorder %s1372_s3, %s1372_s3 }
 0x946   :  { %1677 = vpow2.f32 %v1171_v24  ;;  %p1770_p6 = scmp.ne.s32.totalorder %s1372_s3, %s1769_s4  ;;  %p1775_p8 = scmp.lt.s32.totalorder %s1769_s4, %s1769_s4 }
 0x947   :  { %1679 = vpow2.f32 %v1169_v26 }
 0x948   :  { %p1776_p9 = por %p1775_p8, %p1774_p7 }
 0x94a   :  { %p1777_p10 = pnand %p1776_p9, %p1770_p6 }
 0x94d   :  { %v1674_v27 = vpop.eup %1673 }
 0x94e   :  { %v1173_v32 = vadd.f32 1.0, %v1674_v27 }
 0x94f   :  { %v1676_v28 = vpop.eup %1675 }
 0x950   :  { %v1174_v33 = vadd.f32 1.0, %v1676_v28  ;;  %1681 = vrcp.f32 %v1173_v32 }
 0x952   :  { %1683 = vrcp.f32 %v1174_v33 }
 0x953   :  { %v1678_v30 = vpop.eup %1677 }
 0x954   :  { %v1680_v0 = vpop.eup %1679  ;;  %v1176_v1 = vadd.f32 1.0, %v1678_v30 }
 0x955   :  { %v1175_v8 = vadd.f32 1.0, %v1680_v0 }
 0x956   :  { %1685 = vrcp.f32 %v1176_v1 }
 0x957   :  { %1687 = vrcp.f32 %v1175_v8 }
 0x95d   :  { %v1682_v36 = vpop.eup %1681 }
 0x95e   :  { %v1181_v46 = vmul.f32 %v1682_v36, %v1111_v11 }
 0x95f   :  { %v1684_v37 = vpop.eup %1683 }
 0x960   :  { %v1182_v43 = vmul.f32 %v1684_v37, %v1113_v13 }
 0x963   :  { %v1686_v38 = vpop.eup %1685 }
 0x964   :  { %v1688_v41 = vpop.eup %1687  ;;  %v1184_v45 = vmul.f32 %v1686_v38, %v1117_v17 }
 0x965   :  { %v1183_v47 = vmul.f32 %v1688_v41, %v1115_v15 }
 0x9ae   :  { %v1192_v34 = vpop.permute.xlu1 %1191 }
 0x9af   :  { %v1204_v50 = vmul.f32 %v1192_v34, %v1182_v43 }
 0x9b2   :  { %v1190_v40 = vpop.permute.xlu1 %1189 }
 0x9b3   :  { %v1197_v44 = vsel %vm99_vm0, %v1190_v40, %v1192_v34 }
 0x9b4   :  { %v1194_v48 = vpop.permute.xlu0 %1193  ;;  %v1203_v53 = vmul.f32 %v1197_v44, %v1181_v46 }
 0x9b6   :  { %v1196_v49 = vpop.permute.xlu1 %1195 }
 0x9b7   :  { %v1198_v51 = vsel %vm99_vm0, %v1194_v48, %v1196_v49  ;;  %v1206_v52 = vmul.f32 %v1196_v49, %v1184_v45 }
 0x9b8   :  { %v1205_v54 = vmul.f32 %v1198_v51, %v1183_v47 }
 0x9b9   :  { %v1208_v55 = vpack.c.bf16 %v1206_v52, %v1204_v50 }
 0x9ba   :  { %v1207_v56 = vpack.c.bf16 %v1205_v54, %v1203_v53 }
 0x9bb   :  { %1458 = vmatprep.mubr.msk.bf16.mxu0 %vm99_vm0, %v1208_v55 }
 0x9bc   :  { %1341 = vmatmul.mubr.bf16.vlgmr.msra.gmra.mxu0 %v1207_v56 }
 0x9bd   :  { %1780 = shalt.err (!%p1777_p10)
}
 0x9be   :  { %1377 = dma.vmem_to_hbm [thread:$0]  %s1372_s3, 256, %s1370_s9, [#allocation12], %s1849_s21, %s1848_s2, %s1850_s22  }
 0x9bf   :  { %s1383_s5 = scalar_lea.hbm %s2261_s13, 128  ;;  %s1860_s14 = smov [#allocation13]  }
 0x9c0   :  { %s1384_s10 = sshll.u32 %s1860_s14, 4  ;;  %s1385_s10 = int_to_ptr.vmem [resolvable:$true] %s1384_s10 }
 0x9c1   :  { %s1792_s12 = scalar_lea.vmem %s1385_s10, 256  ;;  %p1797_p12 = scmp.lt.s32.totalorder %s1385_s10, %s1385_s10 }
 0x9c2   :  { %p1793_p11 = scmp.ne.s32.totalorder %s1385_s10, %s1792_s12  ;;  %p1798_p13 = scmp.lt.s32.totalorder %s1792_s12, %s1792_s12 }
 0x9c4   :  { %p1799_p0 = por %p1798_p13, %p1797_p12 }
 0x9c6   :  { %p1800_p1 = pnand %p1799_p0, %p1793_p11 }
 0x9c8   :  { %1803 = shalt.err (!%p1800_p1)
}
 0x9c9   :  { %1390 = dma.vmem_to_hbm [thread:$0]  %s1385_s10, 256, %s1383_s5, [#allocation12], %s1849_s21, %s1848_s2, %s1850_s22  }
 0x9ca   :  { %s1861_s15 = smov [#allocation10]  }
 0x9cb   :  { %s1358_s13 = sshll.u32 %s1861_s15, 4  ;;  %s1359_s13 = int_to_ptr.vmem [resolvable:$true] %s1358_s13 }
 0x9cc   :  { %s1815_s16 = scalar_lea.vmem %s1359_s13, 256  ;;  %p1820_p3 = scmp.lt.s32.totalorder %s1359_s13, %s1359_s13 }
 0x9cd   :  { %p1816_p2 = scmp.ne.s32.totalorder %s1359_s13, %s1815_s16  ;;  %p1821_p4 = scmp.lt.s32.totalorder %s1815_s16, %s1815_s16 }
 0x9cf   :  { %p1822_p5 = por %p1821_p4, %p1820_p3 }
 0x9d1   :  { %p1823_p6 = pnand %p1822_p5, %p1816_p2 }
 0xa7c   :  { %v1342_v57 = vpop.f32.mrf.mxu0 }
 0xa7d   :  { %v1349_v29 = vadd.f32 %v1342_v57, %v2115_v25 }
 0xa7e   :  { %v1344_v58 = vpop.f32.mrf.mxu0 }
 0xa7f   :  { %1351 = vst.msk [vmem:[#allocation10] sm:$0xff] %vm99_vm0, %v1349_v29 }
 0xa80   :  { %v1345_v59 = vpop.f32.mrf.mxu0 }
 0xa81   :  { %v1350_v60 = vadd.f32 %v1345_v59, %v2119_v31 }
 0xa82   :  { %v1347_v61 = vpop.f32.mrf.mxu0 }
 0xa83   :  { %1352 = vst.msk [vmem:[#allocation10 + $0x8] sm:$0xff] %vm99_vm0, %v1350_v60 }
 0xa84   :  { %1826 = shalt.err (!%p1823_p6)
}
 0xa85   :  { %1364 = dma.vmem_to_hbm [thread:$0]  %s1359_s13, 256, %s2259_s11, [#allocation4], %s1849_s21, %s1849_s21, %s1850_s22  }
 0xa86   :  { %1841 = dma.done.wait [#allocation4], 256  }
 0xa87   :  { %1842 = vsyncadd [#allocation4], 4294967040 }
 0xa88   :  { %1843 = dma.done.wait [#allocation12], 512  }
 0xa89   :  { %1844 = vsyncadd [#allocation12], 4294966784 }
 0xa8a   :  { %1400 = vsyncpa [#allocation3], 1 }
 0xa8b   :  { %1401 = vsyncpa [#allocation6], 1 }
 0xa8c   :  { %1402 = vsyncpa [#allocation9], 1 }
 0xa8d   :  { %1403 = vsyncpa [#allocation4], 1 }
 0xa8e   :  { %1404 = vsyncpa [#allocation12], 1 }

</bundles_post_ra>
